<compile_context>
chip_gen: v6e
topology: v6e:2x2x1
jax: 0.10.0
libtpu: 0.0.40
codegen_flags: <defaults>
</compile_context>

<pallas_src>
import math
import jax
import jax.numpy as jnp
from jax.experimental import pallas as pl
from jax.experimental.pallas import tpu as pltpu

# ---- small config consistent with ModelArgs (scaled down) ----
DIM = 64           # args.dim
N_LAYERS = 2       # args.n_layers
N_HEADS = 4        # args.n_heads
N_KV_HEADS = 4     # args.n_kv_heads
VOCAB = 256        # args.vocab_size
HIDDEN = 128       # args.hidden_dim
BATCH = 2          # args.batch_size
SEQ = 8            # prompt length
MAX_SEQ = 16       # args.max_seq_len
EPS = 1e-6         # args.norm_eps
HEAD_DIM = DIM // N_HEADS
HALF = HEAD_DIM // 2

# TODO(synk): if GQA (n_kv_heads < n_heads) is enabled, broadcast K/V per head inside the
# kernel instead of materializing repeated copies.
assert N_HEADS == N_KV_HEADS


# ---------------- fused whole-forward Pallas kernel ----------------

def _transformer_kernel(h_ref, cos_ref, sin_ref, an_ref, wqkv_ref, wo_ref,
                        fn_ref, w13_ref, w2_ref, norm_ref, outw_ref, o_ref):
    x = h_ref[0]                 # (S, DIM) f32 activations for this batch row
    cos = cos_ref[...]           # (S, HALF) f32
    sin = sin_ref[...]

    def rmsnorm(v, w):
        ms = jnp.mean(v * v, axis=-1, keepdims=True)
        return v * jax.lax.rsqrt(ms + EPS) * w

    def rope(t):
        # t: (S, HEAD_DIM) in de-interleaved layout [real half | imag half]
        tr = t[:, :HALF]
        ti = t[:, HALF:]
        return jnp.concatenate([tr * cos - ti * sin, tr * sin + ti * cos], axis=-1)

    def mm(a, b):
        # bf16 MXU matmul with f32 accumulation (elementwise math stays f32)
        return jnp.dot(a.astype(jnp.bfloat16), b.astype(jnp.bfloat16),
                       preferred_element_type=jnp.float32)

    for l in range(N_LAYERS):                              # static unroll over layers
        # ---- attention sub-block ----
        xn = rmsnorm(x, an_ref[l])                         # (S, DIM) f32
        qkv = mm(xn, wqkv_ref[l])                          # (S, 3*DIM) f32
        head_outs = []
        for h in range(N_HEADS):                           # static unroll over heads
            qh = rope(qkv[:, h * HEAD_DIM:(h + 1) * HEAD_DIM])
            kh = rope(qkv[:, DIM + h * HEAD_DIM: DIM + (h + 1) * HEAD_DIM])
            vh = qkv[:, 2 * DIM + h * HEAD_DIM: 2 * DIM + (h + 1) * HEAD_DIM]
            # scores = q @ k^T ; 1/sqrt(head_dim) already folded into the Q projection
            s = jax.lax.dot_general(
                qh.astype(jnp.bfloat16), kh.astype(jnp.bfloat16),
                (((1,), (1,)), ((), ())), preferred_element_type=jnp.float32)
            # no causal mask: the reference module omits it for inference
            s = s - jnp.max(s, axis=-1, keepdims=True)
            p = jnp.exp(s)
            p = p * pl.reciprocal(jnp.sum(p, axis=-1, keepdims=True), approx=True)
            head_outs.append(mm(p, vh))                    # (S, HEAD_DIM)
        attn = jnp.concatenate(head_outs, axis=-1)         # (S, DIM)
        x = x + mm(attn, wo_ref[l])

        # ---- SwiGLU FFN sub-block ----
        hn = rmsnorm(x, fn_ref[l])
        h13 = mm(hn, w13_ref[l])                           # (S, 2*HIDDEN)
        h1 = h13[:, :HIDDEN]
        h3 = h13[:, HIDDEN:]
        x = x + mm((h1 * jax.nn.sigmoid(h1)) * h3, w2_ref[l])

    # ---- final RMSNorm + LM head (lane-dense VOCAB=256 output) ----
    hn = rmsnorm(x, norm_ref[...])
    o_ref[0] = mm(hn, outw_ref[...])                       # (S, VOCAB) f32


def transformer_forward(tokens, kp):
    b, s = tokens.shape
    # token embedding gather stays in JAX glue (data-dependent row gather)
    h0 = jnp.take(kp['tok_emb'], tokens, axis=0)           # (B, S, DIM) f32

    grid_spec = pltpu.PrefetchScalarGridSpec(
        num_scalar_prefetch=0,
        grid=(b,),
        in_specs=[
            pl.BlockSpec((1, s, DIM), lambda i: (i, 0, 0)),          # embeddings (per batch)
            pl.BlockSpec((s, HALF), lambda i: (0, 0)),               # freqs cos
            pl.BlockSpec((s, HALF), lambda i: (0, 0)),               # freqs sin
            pl.BlockSpec((N_LAYERS, 1, DIM), lambda i: (0, 0, 0)),   # attn norm weights
            pl.BlockSpec((N_LAYERS, DIM, 3 * DIM), lambda i: (0, 0, 0)),   # fused WQKV (bf16)
            pl.BlockSpec((N_LAYERS, DIM, DIM), lambda i: (0, 0, 0)),       # WO (bf16)
            pl.BlockSpec((N_LAYERS, 1, DIM), lambda i: (0, 0, 0)),   # ffn norm weights
            pl.BlockSpec((N_LAYERS, DIM, 2 * HIDDEN), lambda i: (0, 0, 0)),  # fused W1|W3
            pl.BlockSpec((N_LAYERS, HIDDEN, DIM), lambda i: (0, 0, 0)),      # W2 (bf16)
            pl.BlockSpec((1, DIM), lambda i: (0, 0)),                # final norm weight
            pl.BlockSpec((DIM, VOCAB), lambda i: (0, 0)),            # LM head (bf16)
        ],
        out_specs=pl.BlockSpec((1, s, VOCAB), lambda i: (i, 0, 0)),
    )
    return pl.pallas_call(
        _transformer_kernel,
        out_shape=jax.ShapeDtypeStruct((b, s, VOCAB), jnp.float32),
        grid_spec=grid_spec,
        compiler_params=pltpu.CompilerParams(
            dimension_semantics=("parallel",)),   # lets v7x's 2nd TensorCore take a batch row
    )(h0, kp['cos'], kp['sin'], kp['attn_norm'], kp['wqkv'], kp['wo'],
      kp['ffn_norm'], kp['w13'], kp['w2'], kp['norm_w'], kp['out_w'])


# ---------------- parameter init / packing (JAX glue) ----------------

def precompute_freqs(size, seq_len, theta=10000.0):
    freqs = 1.0 / theta ** (jnp.arange(0, size, 2, dtype=jnp.float32) / size)
    m = jnp.arange(seq_len, dtype=jnp.float32)
    freqs = jnp.outer(m, freqs)
    return jnp.cos(freqs), jnp.sin(freqs)


def init_raw_params(key):
    def lin(k, in_d, out_d):
        # stored transposed: (in_dim, out_dim), so y = x @ W_t == torch x @ W.T
        return jax.random.normal(k, (in_d, out_d), jnp.float32) * 0.02

    keys = iter(jax.random.split(key, 2 + N_LAYERS * 7))
    params = {
        'tok_emb': jax.random.normal(next(keys), (VOCAB, DIM), jnp.float32) * 0.02,
        'out_w': lin(next(keys), DIM, VOCAB),
        'norm_w': jnp.ones((DIM,), jnp.float32),
        'layers': [],
    }
    for _ in range(N_LAYERS):
        params['layers'].append({
            'wq': lin(next(keys), DIM, N_HEADS * HEAD_DIM),
            'wk': lin(next(keys), DIM, N_KV_HEADS * HEAD_DIM),
            'wv': lin(next(keys), DIM, N_KV_HEADS * HEAD_DIM),
            'wo': lin(next(keys), N_HEADS * HEAD_DIM, DIM),
            'w1': lin(next(keys), DIM, HIDDEN),
            'w3': lin(next(keys), DIM, HIDDEN),
            'w2': lin(next(keys), HIDDEN, DIM),
            'attn_norm': jnp.ones((DIM,), jnp.float32),
            'ffn_norm': jnp.ones((DIM,), jnp.float32),
        })
    cos, sin = precompute_freqs(HEAD_DIM, MAX_SEQ * 2)
    params['freqs_cos'] = cos
    params['freqs_sin'] = sin
    return params


def prep_kernel_params(raw, seqlen):
    # per-head de-interleave permutation: [0,2,...,Dh-2, 1,3,...,Dh-1]
    inner = jnp.concatenate([jnp.arange(0, HEAD_DIM, 2), jnp.arange(1, HEAD_DIM, 2)])
    perm = jnp.concatenate([h * HEAD_DIM + inner for h in range(N_HEADS)])
    scale = 1.0 / math.sqrt(HEAD_DIM)

    wqkv, wo, w13, w2, an, fn = [], [], [], [], [], []
    for lp in raw['layers']:
        wq = lp['wq'][:, perm] * scale       # fold 1/sqrt(head_dim) into the Q projection
        wk = lp['wk'][:, perm]
        wqkv.append(jnp.concatenate([wq, wk, lp['wv']], axis=1))       # (DIM, 3*DIM)
        wo.append(lp['wo'])
        w13.append(jnp.concatenate([lp['w1'], lp['w3']], axis=1))      # (DIM, 2*HIDDEN)
        w2.append(lp['w2'])
        an.append(lp['attn_norm'].reshape(1, DIM))
        fn.append(lp['ffn_norm'].reshape(1, DIM))

    return {
        'tok_emb': raw['tok_emb'],
        'cos': raw['freqs_cos'][:seqlen],
        'sin': raw['freqs_sin'][:seqlen],
        'attn_norm': jnp.stack(an),
        'ffn_norm': jnp.stack(fn),
        'wqkv': jnp.stack(wqkv).astype(jnp.bfloat16),
        'wo': jnp.stack(wo).astype(jnp.bfloat16),
        'w13': jnp.stack(w13).astype(jnp.bfloat16),
        'w2': jnp.stack(w2).astype(jnp.bfloat16),
        'norm_w': raw['norm_w'].reshape(1, DIM),
        'out_w': raw['out_w'].astype(jnp.bfloat16),
    }


# ---------------- pure-JAX f32 reference (matches the torch module) ----------------

def reference_forward(tokens, raw):
    b, s = tokens.shape
    h = jnp.take(raw['tok_emb'], tokens, axis=0)
    cos = raw['freqs_cos'][:s]
    sin = raw['freqs_sin'][:s]

    def rms(x, w):
        return x * jax.lax.rsqrt(jnp.mean(x * x, axis=-1, keepdims=True) + EPS) * w

    def rope(x):  # (B, H, S, Dh), interleaved pairs as in the torch module
        xr = x[..., 0::2]
        xi = x[..., 1::2]
        c = cos[None, None]
        sn = sin[None, None]
        return jnp.stack([xr * c - xi * sn, xr * sn + xi * c], axis=-1).reshape(x.shape)

    for lp in raw['layers']:
        xn = rms(h, lp['attn_norm']).reshape(b * s, DIM)
        q = (xn @ lp['wq']).reshape(b, s, N_HEADS, HEAD_DIM).transpose(0, 2, 1, 3)
        k = (xn @ lp['wk']).reshape(b, s, N_KV_HEADS, HEAD_DIM).transpose(0, 2, 1, 3)
        v = (xn @ lp['wv']).reshape(b, s, N_KV_HEADS, HEAD_DIM).transpose(0, 2, 1, 3)
        q, k = rope(q), rope(k)
        sc = jnp.einsum('bhqd,bhkd->bhqk', q, k) / math.sqrt(HEAD_DIM)
        p = jax.nn.softmax(sc, axis=-1)      # reference module applies no causal mask
        o = jnp.einsum('bhqk,bhkd->bhqd', p, v).transpose(0, 2, 1, 3).reshape(b * s, DIM)
        h = h + (o @ lp['wo']).reshape(b, s, DIM)
        hn = rms(h, lp['ffn_norm']).reshape(b * s, DIM)
        g = jax.nn.silu(hn @ lp['w1']) * (hn @ lp['w3'])
        h = h + (g @ lp['w2']).reshape(b, s, DIM)
    hn = rms(h, raw['norm_w']).reshape(b * s, DIM)
    return (hn @ raw['out_w']).reshape(b, s, VOCAB)


if __name__ == "__main__":
    key = jax.random.PRNGKey(0)
    k_params, k_tok = jax.random.split(key)
    raw = init_raw_params(k_params)
    tokens = jax.random.randint(k_tok, (BATCH, SEQ), 0, VOCAB, dtype=jnp.int32)
    kparams = prep_kernel_params(raw, SEQ)

    fwd = jax.jit(transformer_forward)
    logits = fwd(tokens, kparams)
    jax.block_until_ready(logits)

    assert logits.shape == (BATCH, SEQ, VOCAB)
    assert logits.dtype == jnp.float32
    assert bool(jnp.all(jnp.isfinite(logits)))

    # correctness vs pure-JAX f32 reference (loose tol: bf16 MXU inputs + approx reciprocal)
    ref = reference_forward(tokens, raw)
    err = float(jnp.max(jnp.abs(logits - ref)))
    assert err < 5e-2, f"max |diff| vs reference = {err}"

    print("KERNEL_OK")
</pallas_src>

<mosaic_0001>
module attributes {stable_mosaic.version = 11 : i64} {
  func.func @_transformer_kernel(%arg0: i32, %arg1: memref<1x8x64xf32, #tpu.memory_space<vmem>>, %arg2: memref<8x8xf32, #tpu.memory_space<vmem>>, %arg3: memref<8x8xf32, #tpu.memory_space<vmem>>, %arg4: memref<2x1x64xf32, #tpu.memory_space<vmem>>, %arg5: memref<2x64x192xbf16, #tpu.memory_space<vmem>>, %arg6: memref<2x64x64xbf16, #tpu.memory_space<vmem>>, %arg7: memref<2x1x64xf32, #tpu.memory_space<vmem>>, %arg8: memref<2x64x256xbf16, #tpu.memory_space<vmem>>, %arg9: memref<2x128x64xbf16, #tpu.memory_space<vmem>>, %arg10: memref<1x64xf32, #tpu.memory_space<vmem>>, %arg11: memref<64x256xbf16, #tpu.memory_space<vmem>>, %arg12: memref<1x8x256xf32, #tpu.memory_space<vmem>>) attributes {dimension_semantics = [#tpu.dimension_semantics<parallel>], iteration_bounds = array<i64: 2>, scalar_prefetch = 0 : i64, scratch_operands = 0 : i64, tpu.core_type = #tpu.core_type<tc>, window_params = [{transform_indices = @transform_0, window_bounds = array<i64: 1, 8, 64>}, {pipeline_mode = #tpu.pipeline_mode<synchronous>, transform_indices = @transform_1, window_bounds = array<i64: 8, 8>}, {pipeline_mode = #tpu.pipeline_mode<synchronous>, transform_indices = @transform_2, window_bounds = array<i64: 8, 8>}, {pipeline_mode = #tpu.pipeline_mode<synchronous>, transform_indices = @transform_3, window_bounds = array<i64: 2, 1, 64>}, {pipeline_mode = #tpu.pipeline_mode<synchronous>, transform_indices = @transform_4, window_bounds = array<i64: 2, 64, 192>}, {pipeline_mode = #tpu.pipeline_mode<synchronous>, transform_indices = @transform_5, window_bounds = array<i64: 2, 64, 64>}, {pipeline_mode = #tpu.pipeline_mode<synchronous>, transform_indices = @transform_6, window_bounds = array<i64: 2, 1, 64>}, {pipeline_mode = #tpu.pipeline_mode<synchronous>, transform_indices = @transform_7, window_bounds = array<i64: 2, 64, 256>}, {pipeline_mode = #tpu.pipeline_mode<synchronous>, transform_indices = @transform_8, window_bounds = array<i64: 2, 128, 64>}, {pipeline_mode = #tpu.pipeline_mode<synchronous>, transform_indices = @transform_9, window_bounds = array<i64: 1, 64>}, {pipeline_mode = #tpu.pipeline_mode<synchronous>, transform_indices = @transform_10, window_bounds = array<i64: 64, 256>}, {transform_indices = @transform_11, window_bounds = array<i64: 1, 8, 256>}]} {
    %c0 = arith.constant 0 : index
    %c0_0 = arith.constant 0 : index
    %c0_1 = arith.constant 0 : index
    %0 = vector.load %arg1[%c0, %c0_0, %c0_1] : memref<1x8x64xf32, #tpu.memory_space<vmem>>, vector<1x8x64xf32>
    %1 = vector.shape_cast %0 : vector<1x8x64xf32> to vector<8x64xf32>
    %c0_2 = arith.constant 0 : index
    %c0_3 = arith.constant 0 : index
    %2 = vector.load %arg2[%c0_2, %c0_3] : memref<8x8xf32, #tpu.memory_space<vmem>>, vector<8x8xf32>
    %c0_4 = arith.constant 0 : index
    %c0_5 = arith.constant 0 : index
    %3 = vector.load %arg3[%c0_4, %c0_5] : memref<8x8xf32, #tpu.memory_space<vmem>>, vector<8x8xf32>
    %c0_6 = arith.constant 0 : index
    %c0_7 = arith.constant 0 : index
    %c0_8 = arith.constant 0 : index
    %4 = vector.load %arg4[%c0_6, %c0_7, %c0_8] : memref<2x1x64xf32, #tpu.memory_space<vmem>>, vector<1x1x64xf32>
    %5 = vector.shape_cast %4 : vector<1x1x64xf32> to vector<1x64xf32>
    %6 = arith.mulf %1, %1 : vector<8x64xf32>
    %cst = arith.constant dense<0.000000e+00> : vector<8xf32>
    %7 = vector.multi_reduction <add>, %6, %cst [1] : vector<8x64xf32> to vector<8xf32>
    %8 = vector.shape_cast %7 : vector<8xf32> to vector<8x1xf32>
    %cst_9 = arith.constant 6.400000e+01 : f32
    %9 = vector.broadcast %cst_9 : f32 to vector<8x1xf32>
    %10 = arith.divf %8, %9 : vector<8x1xf32>
    %cst_10 = arith.constant 9.99999997E-7 : f32
    %11 = vector.broadcast %cst_10 : f32 to vector<8x1xf32>
    %12 = arith.addf %10, %11 : vector<8x1xf32>
    %13 = math.rsqrt %12 : vector<8x1xf32>
    %14 = vector.broadcast %13 : vector<8x1xf32> to vector<8x64xf32>
    %15 = arith.mulf %1, %14 : vector<8x64xf32>
    %16 = vector.broadcast %5 : vector<1x64xf32> to vector<8x64xf32>
    %17 = arith.mulf %15, %16 : vector<8x64xf32>
    %c0_11 = arith.constant 0 : index
    %c0_12 = arith.constant 0 : index
    %c0_13 = arith.constant 0 : index
    %18 = vector.load %arg5[%c0_11, %c0_12, %c0_13] : memref<2x64x192xbf16, #tpu.memory_space<vmem>>, vector<1x64x192xbf16>
    %19 = vector.shape_cast %18 : vector<1x64x192xbf16> to vector<64x192xbf16>
    %20 = arith.truncf %17 : vector<8x64xf32> to vector<8x64xbf16>
    %cst_14 = arith.constant dense<0.000000e+00> : vector<8x192xf32>
    %21 = tpu.matmul %20, %19, %cst_14 {dimension_numbers = #tpu.dot_dimension_numbers<[1], [0], [0], [1], [0, 0, 1, 1], [], []>} : vector<8x64xbf16>, vector<64x192xbf16>, vector<8x192xf32> -> vector<8x192xf32>
    %22 = vector.extract_strided_slice %21 {offsets = [0, 0], sizes = [8, 16], strides = [1, 1]} : vector<8x192xf32> to vector<8x16xf32>
    %23 = vector.extract_strided_slice %22 {offsets = [0, 0], sizes = [8, 8], strides = [1, 1]} : vector<8x16xf32> to vector<8x8xf32>
    %24 = vector.extract_strided_slice %22 {offsets = [0, 8], sizes = [8, 8], strides = [1, 1]} : vector<8x16xf32> to vector<8x8xf32>
    %25 = arith.mulf %23, %2 : vector<8x8xf32>
    %26 = arith.mulf %24, %3 : vector<8x8xf32>
    %27 = arith.subf %25, %26 : vector<8x8xf32>
    %28 = arith.mulf %23, %3 : vector<8x8xf32>
    %29 = arith.mulf %24, %2 : vector<8x8xf32>
    %30 = arith.addf %28, %29 : vector<8x8xf32>
    %31 = tpu.concatenate %27, %30 in 1 : vector<8x8xf32>, vector<8x8xf32> -> vector<8x16xf32>
    %32 = vector.extract_strided_slice %21 {offsets = [0, 64], sizes = [8, 16], strides = [1, 1]} : vector<8x192xf32> to vector<8x16xf32>
    %33 = vector.extract_strided_slice %32 {offsets = [0, 0], sizes = [8, 8], strides = [1, 1]} : vector<8x16xf32> to vector<8x8xf32>
    %34 = vector.extract_strided_slice %32 {offsets = [0, 8], sizes = [8, 8], strides = [1, 1]} : vector<8x16xf32> to vector<8x8xf32>
    %35 = arith.mulf %33, %2 : vector<8x8xf32>
    %36 = arith.mulf %34, %3 : vector<8x8xf32>
    %37 = arith.subf %35, %36 : vector<8x8xf32>
    %38 = arith.mulf %33, %3 : vector<8x8xf32>
    %39 = arith.mulf %34, %2 : vector<8x8xf32>
    %40 = arith.addf %38, %39 : vector<8x8xf32>
    %41 = tpu.concatenate %37, %40 in 1 : vector<8x8xf32>, vector<8x8xf32> -> vector<8x16xf32>
    %42 = vector.extract_strided_slice %21 {offsets = [0, 128], sizes = [8, 16], strides = [1, 1]} : vector<8x192xf32> to vector<8x16xf32>
    %43 = arith.truncf %31 : vector<8x16xf32> to vector<8x16xbf16>
    %44 = arith.truncf %41 : vector<8x16xf32> to vector<8x16xbf16>
    %cst_15 = arith.constant dense<0.000000e+00> : vector<8x8xf32>
    %45 = tpu.matmul %43, %44, %cst_15 {dimension_numbers = #tpu.dot_dimension_numbers<[1], [1], [0], [0], [0, 0, 1, 0], [], []>} : vector<8x16xbf16>, vector<8x16xbf16>, vector<8x8xf32> -> vector<8x8xf32>
    %cst_16 = arith.constant dense<0xFF800000> : vector<8xf32>
    %46 = vector.multi_reduction <maximumf>, %45, %cst_16 [1] : vector<8x8xf32> to vector<8xf32>
    %47 = vector.shape_cast %46 : vector<8xf32> to vector<8x1xf32>
    %48 = vector.broadcast %47 : vector<8x1xf32> to vector<8x8xf32>
    %49 = arith.subf %45, %48 : vector<8x8xf32>
    %50 = math.exp %49 : vector<8x8xf32>
    %cst_17 = arith.constant dense<0.000000e+00> : vector<8xf32>
    %51 = vector.multi_reduction <add>, %50, %cst_17 [1] : vector<8x8xf32> to vector<8xf32>
    %52 = vector.shape_cast %51 : vector<8xf32> to vector<8x1xf32>
    %53 = tpu.reciprocal %52 {approx = true} : vector<8x1xf32> -> vector<8x1xf32>
    %54 = vector.broadcast %53 : vector<8x1xf32> to vector<8x8xf32>
    %55 = arith.mulf %50, %54 : vector<8x8xf32>
    %56 = arith.truncf %55 : vector<8x8xf32> to vector<8x8xbf16>
    %57 = arith.truncf %42 : vector<8x16xf32> to vector<8x16xbf16>
    %cst_18 = arith.constant dense<0.000000e+00> : vector<8x16xf32>
    %58 = tpu.matmul %56, %57, %cst_18 {dimension_numbers = #tpu.dot_dimension_numbers<[1], [0], [0], [1], [0, 0, 1, 1], [], []>} : vector<8x8xbf16>, vector<8x16xbf16>, vector<8x16xf32> -> vector<8x16xf32>
    %59 = vector.extract_strided_slice %21 {offsets = [0, 16], sizes = [8, 16], strides = [1, 1]} : vector<8x192xf32> to vector<8x16xf32>
    %60 = vector.extract_strided_slice %59 {offsets = [0, 0], sizes = [8, 8], strides = [1, 1]} : vector<8x16xf32> to vector<8x8xf32>
    %61 = vector.extract_strided_slice %59 {offsets = [0, 8], sizes = [8, 8], strides = [1, 1]} : vector<8x16xf32> to vector<8x8xf32>
    %62 = arith.mulf %60, %2 : vector<8x8xf32>
    %63 = arith.mulf %61, %3 : vector<8x8xf32>
    %64 = arith.subf %62, %63 : vector<8x8xf32>
    %65 = arith.mulf %60, %3 : vector<8x8xf32>
    %66 = arith.mulf %61, %2 : vector<8x8xf32>
    %67 = arith.addf %65, %66 : vector<8x8xf32>
    %68 = tpu.concatenate %64, %67 in 1 : vector<8x8xf32>, vector<8x8xf32> -> vector<8x16xf32>
    %69 = vector.extract_strided_slice %21 {offsets = [0, 80], sizes = [8, 16], strides = [1, 1]} : vector<8x192xf32> to vector<8x16xf32>
    %70 = vector.extract_strided_slice %69 {offsets = [0, 0], sizes = [8, 8], strides = [1, 1]} : vector<8x16xf32> to vector<8x8xf32>
    %71 = vector.extract_strided_slice %69 {offsets = [0, 8], sizes = [8, 8], strides = [1, 1]} : vector<8x16xf32> to vector<8x8xf32>
    %72 = arith.mulf %70, %2 : vector<8x8xf32>
    %73 = arith.mulf %71, %3 : vector<8x8xf32>
    %74 = arith.subf %72, %73 : vector<8x8xf32>
    %75 = arith.mulf %70, %3 : vector<8x8xf32>
    %76 = arith.mulf %71, %2 : vector<8x8xf32>
    %77 = arith.addf %75, %76 : vector<8x8xf32>
    %78 = tpu.concatenate %74, %77 in 1 : vector<8x8xf32>, vector<8x8xf32> -> vector<8x16xf32>
    %79 = vector.extract_strided_slice %21 {offsets = [0, 144], sizes = [8, 16], strides = [1, 1]} : vector<8x192xf32> to vector<8x16xf32>
    %80 = arith.truncf %68 : vector<8x16xf32> to vector<8x16xbf16>
    %81 = arith.truncf %78 : vector<8x16xf32> to vector<8x16xbf16>
    %cst_19 = arith.constant dense<0.000000e+00> : vector<8x8xf32>
    %82 = tpu.matmul %80, %81, %cst_19 {dimension_numbers = #tpu.dot_dimension_numbers<[1], [1], [0], [0], [0, 0, 1, 0], [], []>} : vector<8x16xbf16>, vector<8x16xbf16>, vector<8x8xf32> -> vector<8x8xf32>
    %cst_20 = arith.constant dense<0xFF800000> : vector<8xf32>
    %83 = vector.multi_reduction <maximumf>, %82, %cst_20 [1] : vector<8x8xf32> to vector<8xf32>
    %84 = vector.shape_cast %83 : vector<8xf32> to vector<8x1xf32>
    %85 = vector.broadcast %84 : vector<8x1xf32> to vector<8x8xf32>
    %86 = arith.subf %82, %85 : vector<8x8xf32>
    %87 = math.exp %86 : vector<8x8xf32>
    %cst_21 = arith.constant dense<0.000000e+00> : vector<8xf32>
    %88 = vector.multi_reduction <add>, %87, %cst_21 [1] : vector<8x8xf32> to vector<8xf32>
    %89 = vector.shape_cast %88 : vector<8xf32> to vector<8x1xf32>
    %90 = tpu.reciprocal %89 {approx = true} : vector<8x1xf32> -> vector<8x1xf32>
    %91 = vector.broadcast %90 : vector<8x1xf32> to vector<8x8xf32>
    %92 = arith.mulf %87, %91 : vector<8x8xf32>
    %93 = arith.truncf %92 : vector<8x8xf32> to vector<8x8xbf16>
    %94 = arith.truncf %79 : vector<8x16xf32> to vector<8x16xbf16>
    %cst_22 = arith.constant dense<0.000000e+00> : vector<8x16xf32>
    %95 = tpu.matmul %93, %94, %cst_22 {dimension_numbers = #tpu.dot_dimension_numbers<[1], [0], [0], [1], [0, 0, 1, 1], [], []>} : vector<8x8xbf16>, vector<8x16xbf16>, vector<8x16xf32> -> vector<8x16xf32>
    %96 = vector.extract_strided_slice %21 {offsets = [0, 32], sizes = [8, 16], strides = [1, 1]} : vector<8x192xf32> to vector<8x16xf32>
    %97 = vector.extract_strided_slice %96 {offsets = [0, 0], sizes = [8, 8], strides = [1, 1]} : vector<8x16xf32> to vector<8x8xf32>
    %98 = vector.extract_strided_slice %96 {offsets = [0, 8], sizes = [8, 8], strides = [1, 1]} : vector<8x16xf32> to vector<8x8xf32>
    %99 = arith.mulf %97, %2 : vector<8x8xf32>
    %100 = arith.mulf %98, %3 : vector<8x8xf32>
    %101 = arith.subf %99, %100 : vector<8x8xf32>
    %102 = arith.mulf %97, %3 : vector<8x8xf32>
    %103 = arith.mulf %98, %2 : vector<8x8xf32>
    %104 = arith.addf %102, %103 : vector<8x8xf32>
    %105 = tpu.concatenate %101, %104 in 1 : vector<8x8xf32>, vector<8x8xf32> -> vector<8x16xf32>
    %106 = vector.extract_strided_slice %21 {offsets = [0, 96], sizes = [8, 16], strides = [1, 1]} : vector<8x192xf32> to vector<8x16xf32>
    %107 = vector.extract_strided_slice %106 {offsets = [0, 0], sizes = [8, 8], strides = [1, 1]} : vector<8x16xf32> to vector<8x8xf32>
    %108 = vector.extract_strided_slice %106 {offsets = [0, 8], sizes = [8, 8], strides = [1, 1]} : vector<8x16xf32> to vector<8x8xf32>
    %109 = arith.mulf %107, %2 : vector<8x8xf32>
    %110 = arith.mulf %108, %3 : vector<8x8xf32>
    %111 = arith.subf %109, %110 : vector<8x8xf32>
    %112 = arith.mulf %107, %3 : vector<8x8xf32>
    %113 = arith.mulf %108, %2 : vector<8x8xf32>
    %114 = arith.addf %112, %113 : vector<8x8xf32>
    %115 = tpu.concatenate %111, %114 in 1 : vector<8x8xf32>, vector<8x8xf32> -> vector<8x16xf32>
    %116 = vector.extract_strided_slice %21 {offsets = [0, 160], sizes = [8, 16], strides = [1, 1]} : vector<8x192xf32> to vector<8x16xf32>
    %117 = arith.truncf %105 : vector<8x16xf32> to vector<8x16xbf16>
    %118 = arith.truncf %115 : vector<8x16xf32> to vector<8x16xbf16>
    %cst_23 = arith.constant dense<0.000000e+00> : vector<8x8xf32>
    %119 = tpu.matmul %117, %118, %cst_23 {dimension_numbers = #tpu.dot_dimension_numbers<[1], [1], [0], [0], [0, 0, 1, 0], [], []>} : vector<8x16xbf16>, vector<8x16xbf16>, vector<8x8xf32> -> vector<8x8xf32>
    %cst_24 = arith.constant dense<0xFF800000> : vector<8xf32>
    %120 = vector.multi_reduction <maximumf>, %119, %cst_24 [1] : vector<8x8xf32> to vector<8xf32>
    %121 = vector.shape_cast %120 : vector<8xf32> to vector<8x1xf32>
    %122 = vector.broadcast %121 : vector<8x1xf32> to vector<8x8xf32>
    %123 = arith.subf %119, %122 : vector<8x8xf32>
    %124 = math.exp %123 : vector<8x8xf32>
    %cst_25 = arith.constant dense<0.000000e+00> : vector<8xf32>
    %125 = vector.multi_reduction <add>, %124, %cst_25 [1] : vector<8x8xf32> to vector<8xf32>
    %126 = vector.shape_cast %125 : vector<8xf32> to vector<8x1xf32>
    %127 = tpu.reciprocal %126 {approx = true} : vector<8x1xf32> -> vector<8x1xf32>
    %128 = vector.broadcast %127 : vector<8x1xf32> to vector<8x8xf32>
    %129 = arith.mulf %124, %128 : vector<8x8xf32>
    %130 = arith.truncf %129 : vector<8x8xf32> to vector<8x8xbf16>
    %131 = arith.truncf %116 : vector<8x16xf32> to vector<8x16xbf16>
    %cst_26 = arith.constant dense<0.000000e+00> : vector<8x16xf32>
    %132 = tpu.matmul %130, %131, %cst_26 {dimension_numbers = #tpu.dot_dimension_numbers<[1], [0], [0], [1], [0, 0, 1, 1], [], []>} : vector<8x8xbf16>, vector<8x16xbf16>, vector<8x16xf32> -> vector<8x16xf32>
    %133 = vector.extract_strided_slice %21 {offsets = [0, 48], sizes = [8, 16], strides = [1, 1]} : vector<8x192xf32> to vector<8x16xf32>
    %134 = vector.extract_strided_slice %133 {offsets = [0, 0], sizes = [8, 8], strides = [1, 1]} : vector<8x16xf32> to vector<8x8xf32>
    %135 = vector.extract_strided_slice %133 {offsets = [0, 8], sizes = [8, 8], strides = [1, 1]} : vector<8x16xf32> to vector<8x8xf32>
    %136 = arith.mulf %134, %2 : vector<8x8xf32>
    %137 = arith.mulf %135, %3 : vector<8x8xf32>
    %138 = arith.subf %136, %137 : vector<8x8xf32>
    %139 = arith.mulf %134, %3 : vector<8x8xf32>
    %140 = arith.mulf %135, %2 : vector<8x8xf32>
    %141 = arith.addf %139, %140 : vector<8x8xf32>
    %142 = tpu.concatenate %138, %141 in 1 : vector<8x8xf32>, vector<8x8xf32> -> vector<8x16xf32>
    %143 = vector.extract_strided_slice %21 {offsets = [0, 112], sizes = [8, 16], strides = [1, 1]} : vector<8x192xf32> to vector<8x16xf32>
    %144 = vector.extract_strided_slice %143 {offsets = [0, 0], sizes = [8, 8], strides = [1, 1]} : vector<8x16xf32> to vector<8x8xf32>
    %145 = vector.extract_strided_slice %143 {offsets = [0, 8], sizes = [8, 8], strides = [1, 1]} : vector<8x16xf32> to vector<8x8xf32>
    %146 = arith.mulf %144, %2 : vector<8x8xf32>
    %147 = arith.mulf %145, %3 : vector<8x8xf32>
    %148 = arith.subf %146, %147 : vector<8x8xf32>
    %149 = arith.mulf %144, %3 : vector<8x8xf32>
    %150 = arith.mulf %145, %2 : vector<8x8xf32>
    %151 = arith.addf %149, %150 : vector<8x8xf32>
    %152 = tpu.concatenate %148, %151 in 1 : vector<8x8xf32>, vector<8x8xf32> -> vector<8x16xf32>
    %153 = vector.extract_strided_slice %21 {offsets = [0, 176], sizes = [8, 16], strides = [1, 1]} : vector<8x192xf32> to vector<8x16xf32>
    %154 = arith.truncf %142 : vector<8x16xf32> to vector<8x16xbf16>
    %155 = arith.truncf %152 : vector<8x16xf32> to vector<8x16xbf16>
    %cst_27 = arith.constant dense<0.000000e+00> : vector<8x8xf32>
    %156 = tpu.matmul %154, %155, %cst_27 {dimension_numbers = #tpu.dot_dimension_numbers<[1], [1], [0], [0], [0, 0, 1, 0], [], []>} : vector<8x16xbf16>, vector<8x16xbf16>, vector<8x8xf32> -> vector<8x8xf32>
    %cst_28 = arith.constant dense<0xFF800000> : vector<8xf32>
    %157 = vector.multi_reduction <maximumf>, %156, %cst_28 [1] : vector<8x8xf32> to vector<8xf32>
    %158 = vector.shape_cast %157 : vector<8xf32> to vector<8x1xf32>
    %159 = vector.broadcast %158 : vector<8x1xf32> to vector<8x8xf32>
    %160 = arith.subf %156, %159 : vector<8x8xf32>
    %161 = math.exp %160 : vector<8x8xf32>
    %cst_29 = arith.constant dense<0.000000e+00> : vector<8xf32>
    %162 = vector.multi_reduction <add>, %161, %cst_29 [1] : vector<8x8xf32> to vector<8xf32>
    %163 = vector.shape_cast %162 : vector<8xf32> to vector<8x1xf32>
    %164 = tpu.reciprocal %163 {approx = true} : vector<8x1xf32> -> vector<8x1xf32>
    %165 = vector.broadcast %164 : vector<8x1xf32> to vector<8x8xf32>
    %166 = arith.mulf %161, %165 : vector<8x8xf32>
    %167 = arith.truncf %166 : vector<8x8xf32> to vector<8x8xbf16>
    %168 = arith.truncf %153 : vector<8x16xf32> to vector<8x16xbf16>
    %cst_30 = arith.constant dense<0.000000e+00> : vector<8x16xf32>
    %169 = tpu.matmul %167, %168, %cst_30 {dimension_numbers = #tpu.dot_dimension_numbers<[1], [0], [0], [1], [0, 0, 1, 1], [], []>} : vector<8x8xbf16>, vector<8x16xbf16>, vector<8x16xf32> -> vector<8x16xf32>
    %170 = tpu.concatenate %58, %95, %132, %169 in 1 : vector<8x16xf32>, vector<8x16xf32>, vector<8x16xf32>, vector<8x16xf32> -> vector<8x64xf32>
    %c0_31 = arith.constant 0 : index
    %c0_32 = arith.constant 0 : index
    %c0_33 = arith.constant 0 : index
    %171 = vector.load %arg6[%c0_31, %c0_32, %c0_33] : memref<2x64x64xbf16, #tpu.memory_space<vmem>>, vector<1x64x64xbf16>
    %172 = vector.shape_cast %171 : vector<1x64x64xbf16> to vector<64x64xbf16>
    %173 = arith.truncf %170 : vector<8x64xf32> to vector<8x64xbf16>
    %cst_34 = arith.constant dense<0.000000e+00> : vector<8x64xf32>
    %174 = tpu.matmul %173, %172, %cst_34 {dimension_numbers = #tpu.dot_dimension_numbers<[1], [0], [0], [1], [0, 0, 1, 1], [], []>} : vector<8x64xbf16>, vector<64x64xbf16>, vector<8x64xf32> -> vector<8x64xf32>
    %175 = arith.addf %1, %174 : vector<8x64xf32>
    %c0_35 = arith.constant 0 : index
    %c0_36 = arith.constant 0 : index
    %c0_37 = arith.constant 0 : index
    %176 = vector.load %arg7[%c0_35, %c0_36, %c0_37] : memref<2x1x64xf32, #tpu.memory_space<vmem>>, vector<1x1x64xf32>
    %177 = vector.shape_cast %176 : vector<1x1x64xf32> to vector<1x64xf32>
    %178 = arith.mulf %175, %175 : vector<8x64xf32>
    %cst_38 = arith.constant dense<0.000000e+00> : vector<8xf32>
    %179 = vector.multi_reduction <add>, %178, %cst_38 [1] : vector<8x64xf32> to vector<8xf32>
    %180 = vector.shape_cast %179 : vector<8xf32> to vector<8x1xf32>
    %cst_39 = arith.constant 6.400000e+01 : f32
    %181 = vector.broadcast %cst_39 : f32 to vector<8x1xf32>
    %182 = arith.divf %180, %181 : vector<8x1xf32>
    %cst_40 = arith.constant 9.99999997E-7 : f32
    %183 = vector.broadcast %cst_40 : f32 to vector<8x1xf32>
    %184 = arith.addf %182, %183 : vector<8x1xf32>
    %185 = math.rsqrt %184 : vector<8x1xf32>
    %186 = vector.broadcast %185 : vector<8x1xf32> to vector<8x64xf32>
    %187 = arith.mulf %175, %186 : vector<8x64xf32>
    %188 = vector.broadcast %177 : vector<1x64xf32> to vector<8x64xf32>
    %189 = arith.mulf %187, %188 : vector<8x64xf32>
    %c0_41 = arith.constant 0 : index
    %c0_42 = arith.constant 0 : index
    %c0_43 = arith.constant 0 : index
    %190 = vector.load %arg8[%c0_41, %c0_42, %c0_43] : memref<2x64x256xbf16, #tpu.memory_space<vmem>>, vector<1x64x256xbf16>
    %191 = vector.shape_cast %190 : vector<1x64x256xbf16> to vector<64x256xbf16>
    %192 = arith.truncf %189 : vector<8x64xf32> to vector<8x64xbf16>
    %cst_44 = arith.constant dense<0.000000e+00> : vector<8x256xf32>
    %193 = tpu.matmul %192, %191, %cst_44 {dimension_numbers = #tpu.dot_dimension_numbers<[1], [0], [0], [1], [0, 0, 1, 1], [], []>} : vector<8x64xbf16>, vector<64x256xbf16>, vector<8x256xf32> -> vector<8x256xf32>
    %194 = vector.extract_strided_slice %193 {offsets = [0, 0], sizes = [8, 128], strides = [1, 1]} : vector<8x256xf32> to vector<8x128xf32>
    %195 = vector.extract_strided_slice %193 {offsets = [0, 128], sizes = [8, 128], strides = [1, 1]} : vector<8x256xf32> to vector<8x128xf32>
    %196 = arith.negf %194 : vector<8x128xf32>
    %197 = math.exp %196 : vector<8x128xf32>
    %cst_45 = arith.constant 1.000000e+00 : f32
    %198 = vector.broadcast %cst_45 : f32 to vector<8x128xf32>
    %199 = arith.addf %198, %197 : vector<8x128xf32>
    %200 = arith.divf %198, %199 : vector<8x128xf32>
    %201 = arith.mulf %194, %200 : vector<8x128xf32>
    %202 = arith.mulf %201, %195 : vector<8x128xf32>
    %c0_46 = arith.constant 0 : index
    %c0_47 = arith.constant 0 : index
    %c0_48 = arith.constant 0 : index
    %203 = vector.load %arg9[%c0_46, %c0_47, %c0_48] : memref<2x128x64xbf16, #tpu.memory_space<vmem>>, vector<1x128x64xbf16>
    %204 = vector.shape_cast %203 : vector<1x128x64xbf16> to vector<128x64xbf16>
    %205 = arith.truncf %202 : vector<8x128xf32> to vector<8x128xbf16>
    %cst_49 = arith.constant dense<0.000000e+00> : vector<8x64xf32>
    %206 = tpu.matmul %205, %204, %cst_49 {dimension_numbers = #tpu.dot_dimension_numbers<[1], [0], [0], [1], [0, 0, 1, 1], [], []>} : vector<8x128xbf16>, vector<128x64xbf16>, vector<8x64xf32> -> vector<8x64xf32>
    %207 = arith.addf %175, %206 : vector<8x64xf32>
    %c1 = arith.constant 1 : index
    %c0_50 = arith.constant 0 : index
    %c0_51 = arith.constant 0 : index
    %208 = vector.load %arg4[%c1, %c0_50, %c0_51] : memref<2x1x64xf32, #tpu.memory_space<vmem>>, vector<1x1x64xf32>
    %209 = vector.shape_cast %208 : vector<1x1x64xf32> to vector<1x64xf32>
    %210 = arith.mulf %207, %207 : vector<8x64xf32>
    %cst_52 = arith.constant dense<0.000000e+00> : vector<8xf32>
    %211 = vector.multi_reduction <add>, %210, %cst_52 [1] : vector<8x64xf32> to vector<8xf32>
    %212 = vector.shape_cast %211 : vector<8xf32> to vector<8x1xf32>
    %cst_53 = arith.constant 6.400000e+01 : f32
    %213 = vector.broadcast %cst_53 : f32 to vector<8x1xf32>
    %214 = arith.divf %212, %213 : vector<8x1xf32>
    %cst_54 = arith.constant 9.99999997E-7 : f32
    %215 = vector.broadcast %cst_54 : f32 to vector<8x1xf32>
    %216 = arith.addf %214, %215 : vector<8x1xf32>
    %217 = math.rsqrt %216 : vector<8x1xf32>
    %218 = vector.broadcast %217 : vector<8x1xf32> to vector<8x64xf32>
    %219 = arith.mulf %207, %218 : vector<8x64xf32>
    %220 = vector.broadcast %209 : vector<1x64xf32> to vector<8x64xf32>
    %221 = arith.mulf %219, %220 : vector<8x64xf32>
    %c1_55 = arith.constant 1 : index
    %c0_56 = arith.constant 0 : index
    %c0_57 = arith.constant 0 : index
    %222 = vector.load %arg5[%c1_55, %c0_56, %c0_57] : memref<2x64x192xbf16, #tpu.memory_space<vmem>>, vector<1x64x192xbf16>
    %223 = vector.shape_cast %222 : vector<1x64x192xbf16> to vector<64x192xbf16>
    %224 = arith.truncf %221 : vector<8x64xf32> to vector<8x64xbf16>
    %cst_58 = arith.constant dense<0.000000e+00> : vector<8x192xf32>
    %225 = tpu.matmul %224, %223, %cst_58 {dimension_numbers = #tpu.dot_dimension_numbers<[1], [0], [0], [1], [0, 0, 1, 1], [], []>} : vector<8x64xbf16>, vector<64x192xbf16>, vector<8x192xf32> -> vector<8x192xf32>
    %226 = vector.extract_strided_slice %225 {offsets = [0, 0], sizes = [8, 16], strides = [1, 1]} : vector<8x192xf32> to vector<8x16xf32>
    %227 = vector.extract_strided_slice %226 {offsets = [0, 0], sizes = [8, 8], strides = [1, 1]} : vector<8x16xf32> to vector<8x8xf32>
    %228 = vector.extract_strided_slice %226 {offsets = [0, 8], sizes = [8, 8], strides = [1, 1]} : vector<8x16xf32> to vector<8x8xf32>
    %229 = arith.mulf %227, %2 : vector<8x8xf32>
    %230 = arith.mulf %228, %3 : vector<8x8xf32>
    %231 = arith.subf %229, %230 : vector<8x8xf32>
    %232 = arith.mulf %227, %3 : vector<8x8xf32>
    %233 = arith.mulf %228, %2 : vector<8x8xf32>
    %234 = arith.addf %232, %233 : vector<8x8xf32>
    %235 = tpu.concatenate %231, %234 in 1 : vector<8x8xf32>, vector<8x8xf32> -> vector<8x16xf32>
    %236 = vector.extract_strided_slice %225 {offsets = [0, 64], sizes = [8, 16], strides = [1, 1]} : vector<8x192xf32> to vector<8x16xf32>
    %237 = vector.extract_strided_slice %236 {offsets = [0, 0], sizes = [8, 8], strides = [1, 1]} : vector<8x16xf32> to vector<8x8xf32>
    %238 = vector.extract_strided_slice %236 {offsets = [0, 8], sizes = [8, 8], strides = [1, 1]} : vector<8x16xf32> to vector<8x8xf32>
    %239 = arith.mulf %237, %2 : vector<8x8xf32>
    %240 = arith.mulf %238, %3 : vector<8x8xf32>
    %241 = arith.subf %239, %240 : vector<8x8xf32>
    %242 = arith.mulf %237, %3 : vector<8x8xf32>
    %243 = arith.mulf %238, %2 : vector<8x8xf32>
    %244 = arith.addf %242, %243 : vector<8x8xf32>
    %245 = tpu.concatenate %241, %244 in 1 : vector<8x8xf32>, vector<8x8xf32> -> vector<8x16xf32>
    %246 = vector.extract_strided_slice %225 {offsets = [0, 128], sizes = [8, 16], strides = [1, 1]} : vector<8x192xf32> to vector<8x16xf32>
    %247 = arith.truncf %235 : vector<8x16xf32> to vector<8x16xbf16>
    %248 = arith.truncf %245 : vector<8x16xf32> to vector<8x16xbf16>
    %cst_59 = arith.constant dense<0.000000e+00> : vector<8x8xf32>
    %249 = tpu.matmul %247, %248, %cst_59 {dimension_numbers = #tpu.dot_dimension_numbers<[1], [1], [0], [0], [0, 0, 1, 0], [], []>} : vector<8x16xbf16>, vector<8x16xbf16>, vector<8x8xf32> -> vector<8x8xf32>
    %cst_60 = arith.constant dense<0xFF800000> : vector<8xf32>
    %250 = vector.multi_reduction <maximumf>, %249, %cst_60 [1] : vector<8x8xf32> to vector<8xf32>
    %251 = vector.shape_cast %250 : vector<8xf32> to vector<8x1xf32>
    %252 = vector.broadcast %251 : vector<8x1xf32> to vector<8x8xf32>
    %253 = arith.subf %249, %252 : vector<8x8xf32>
    %254 = math.exp %253 : vector<8x8xf32>
    %cst_61 = arith.constant dense<0.000000e+00> : vector<8xf32>
    %255 = vector.multi_reduction <add>, %254, %cst_61 [1] : vector<8x8xf32> to vector<8xf32>
    %256 = vector.shape_cast %255 : vector<8xf32> to vector<8x1xf32>
    %257 = tpu.reciprocal %256 {approx = true} : vector<8x1xf32> -> vector<8x1xf32>
    %258 = vector.broadcast %257 : vector<8x1xf32> to vector<8x8xf32>
    %259 = arith.mulf %254, %258 : vector<8x8xf32>
    %260 = arith.truncf %259 : vector<8x8xf32> to vector<8x8xbf16>
    %261 = arith.truncf %246 : vector<8x16xf32> to vector<8x16xbf16>
    %cst_62 = arith.constant dense<0.000000e+00> : vector<8x16xf32>
    %262 = tpu.matmul %260, %261, %cst_62 {dimension_numbers = #tpu.dot_dimension_numbers<[1], [0], [0], [1], [0, 0, 1, 1], [], []>} : vector<8x8xbf16>, vector<8x16xbf16>, vector<8x16xf32> -> vector<8x16xf32>
    %263 = vector.extract_strided_slice %225 {offsets = [0, 16], sizes = [8, 16], strides = [1, 1]} : vector<8x192xf32> to vector<8x16xf32>
    %264 = vector.extract_strided_slice %263 {offsets = [0, 0], sizes = [8, 8], strides = [1, 1]} : vector<8x16xf32> to vector<8x8xf32>
    %265 = vector.extract_strided_slice %263 {offsets = [0, 8], sizes = [8, 8], strides = [1, 1]} : vector<8x16xf32> to vector<8x8xf32>
    %266 = arith.mulf %264, %2 : vector<8x8xf32>
    %267 = arith.mulf %265, %3 : vector<8x8xf32>
    %268 = arith.subf %266, %267 : vector<8x8xf32>
    %269 = arith.mulf %264, %3 : vector<8x8xf32>
    %270 = arith.mulf %265, %2 : vector<8x8xf32>
    %271 = arith.addf %269, %270 : vector<8x8xf32>
    %272 = tpu.concatenate %268, %271 in 1 : vector<8x8xf32>, vector<8x8xf32> -> vector<8x16xf32>
    %273 = vector.extract_strided_slice %225 {offsets = [0, 80], sizes = [8, 16], strides = [1, 1]} : vector<8x192xf32> to vector<8x16xf32>
    %274 = vector.extract_strided_slice %273 {offsets = [0, 0], sizes = [8, 8], strides = [1, 1]} : vector<8x16xf32> to vector<8x8xf32>
    %275 = vector.extract_strided_slice %273 {offsets = [0, 8], sizes = [8, 8], strides = [1, 1]} : vector<8x16xf32> to vector<8x8xf32>
    %276 = arith.mulf %274, %2 : vector<8x8xf32>
    %277 = arith.mulf %275, %3 : vector<8x8xf32>
    %278 = arith.subf %276, %277 : vector<8x8xf32>
    %279 = arith.mulf %274, %3 : vector<8x8xf32>
    %280 = arith.mulf %275, %2 : vector<8x8xf32>
    %281 = arith.addf %279, %280 : vector<8x8xf32>
    %282 = tpu.concatenate %278, %281 in 1 : vector<8x8xf32>, vector<8x8xf32> -> vector<8x16xf32>
    %283 = vector.extract_strided_slice %225 {offsets = [0, 144], sizes = [8, 16], strides = [1, 1]} : vector<8x192xf32> to vector<8x16xf32>
    %284 = arith.truncf %272 : vector<8x16xf32> to vector<8x16xbf16>
    %285 = arith.truncf %282 : vector<8x16xf32> to vector<8x16xbf16>
    %cst_63 = arith.constant dense<0.000000e+00> : vector<8x8xf32>
    %286 = tpu.matmul %284, %285, %cst_63 {dimension_numbers = #tpu.dot_dimension_numbers<[1], [1], [0], [0], [0, 0, 1, 0], [], []>} : vector<8x16xbf16>, vector<8x16xbf16>, vector<8x8xf32> -> vector<8x8xf32>
    %cst_64 = arith.constant dense<0xFF800000> : vector<8xf32>
    %287 = vector.multi_reduction <maximumf>, %286, %cst_64 [1] : vector<8x8xf32> to vector<8xf32>
    %288 = vector.shape_cast %287 : vector<8xf32> to vector<8x1xf32>
    %289 = vector.broadcast %288 : vector<8x1xf32> to vector<8x8xf32>
    %290 = arith.subf %286, %289 : vector<8x8xf32>
    %291 = math.exp %290 : vector<8x8xf32>
    %cst_65 = arith.constant dense<0.000000e+00> : vector<8xf32>
    %292 = vector.multi_reduction <add>, %291, %cst_65 [1] : vector<8x8xf32> to vector<8xf32>
    %293 = vector.shape_cast %292 : vector<8xf32> to vector<8x1xf32>
    %294 = tpu.reciprocal %293 {approx = true} : vector<8x1xf32> -> vector<8x1xf32>
    %295 = vector.broadcast %294 : vector<8x1xf32> to vector<8x8xf32>
    %296 = arith.mulf %291, %295 : vector<8x8xf32>
    %297 = arith.truncf %296 : vector<8x8xf32> to vector<8x8xbf16>
    %298 = arith.truncf %283 : vector<8x16xf32> to vector<8x16xbf16>
    %cst_66 = arith.constant dense<0.000000e+00> : vector<8x16xf32>
    %299 = tpu.matmul %297, %298, %cst_66 {dimension_numbers = #tpu.dot_dimension_numbers<[1], [0], [0], [1], [0, 0, 1, 1], [], []>} : vector<8x8xbf16>, vector<8x16xbf16>, vector<8x16xf32> -> vector<8x16xf32>
    %300 = vector.extract_strided_slice %225 {offsets = [0, 32], sizes = [8, 16], strides = [1, 1]} : vector<8x192xf32> to vector<8x16xf32>
    %301 = vector.extract_strided_slice %300 {offsets = [0, 0], sizes = [8, 8], strides = [1, 1]} : vector<8x16xf32> to vector<8x8xf32>
    %302 = vector.extract_strided_slice %300 {offsets = [0, 8], sizes = [8, 8], strides = [1, 1]} : vector<8x16xf32> to vector<8x8xf32>
    %303 = arith.mulf %301, %2 : vector<8x8xf32>
    %304 = arith.mulf %302, %3 : vector<8x8xf32>
    %305 = arith.subf %303, %304 : vector<8x8xf32>
    %306 = arith.mulf %301, %3 : vector<8x8xf32>
    %307 = arith.mulf %302, %2 : vector<8x8xf32>
    %308 = arith.addf %306, %307 : vector<8x8xf32>
    %309 = tpu.concatenate %305, %308 in 1 : vector<8x8xf32>, vector<8x8xf32> -> vector<8x16xf32>
    %310 = vector.extract_strided_slice %225 {offsets = [0, 96], sizes = [8, 16], strides = [1, 1]} : vector<8x192xf32> to vector<8x16xf32>
    %311 = vector.extract_strided_slice %310 {offsets = [0, 0], sizes = [8, 8], strides = [1, 1]} : vector<8x16xf32> to vector<8x8xf32>
    %312 = vector.extract_strided_slice %310 {offsets = [0, 8], sizes = [8, 8], strides = [1, 1]} : vector<8x16xf32> to vector<8x8xf32>
    %313 = arith.mulf %311, %2 : vector<8x8xf32>
    %314 = arith.mulf %312, %3 : vector<8x8xf32>
    %315 = arith.subf %313, %314 : vector<8x8xf32>
    %316 = arith.mulf %311, %3 : vector<8x8xf32>
    %317 = arith.mulf %312, %2 : vector<8x8xf32>
    %318 = arith.addf %316, %317 : vector<8x8xf32>
    %319 = tpu.concatenate %315, %318 in 1 : vector<8x8xf32>, vector<8x8xf32> -> vector<8x16xf32>
    %320 = vector.extract_strided_slice %225 {offsets = [0, 160], sizes = [8, 16], strides = [1, 1]} : vector<8x192xf32> to vector<8x16xf32>
    %321 = arith.truncf %309 : vector<8x16xf32> to vector<8x16xbf16>
    %322 = arith.truncf %319 : vector<8x16xf32> to vector<8x16xbf16>
    %cst_67 = arith.constant dense<0.000000e+00> : vector<8x8xf32>
    %323 = tpu.matmul %321, %322, %cst_67 {dimension_numbers = #tpu.dot_dimension_numbers<[1], [1], [0], [0], [0, 0, 1, 0], [], []>} : vector<8x16xbf16>, vector<8x16xbf16>, vector<8x8xf32> -> vector<8x8xf32>
    %cst_68 = arith.constant dense<0xFF800000> : vector<8xf32>
    %324 = vector.multi_reduction <maximumf>, %323, %cst_68 [1] : vector<8x8xf32> to vector<8xf32>
    %325 = vector.shape_cast %324 : vector<8xf32> to vector<8x1xf32>
    %326 = vector.broadcast %325 : vector<8x1xf32> to vector<8x8xf32>
    %327 = arith.subf %323, %326 : vector<8x8xf32>
    %328 = math.exp %327 : vector<8x8xf32>
    %cst_69 = arith.constant dense<0.000000e+00> : vector<8xf32>
    %329 = vector.multi_reduction <add>, %328, %cst_69 [1] : vector<8x8xf32> to vector<8xf32>
    %330 = vector.shape_cast %329 : vector<8xf32> to vector<8x1xf32>
    %331 = tpu.reciprocal %330 {approx = true} : vector<8x1xf32> -> vector<8x1xf32>
    %332 = vector.broadcast %331 : vector<8x1xf32> to vector<8x8xf32>
    %333 = arith.mulf %328, %332 : vector<8x8xf32>
    %334 = arith.truncf %333 : vector<8x8xf32> to vector<8x8xbf16>
    %335 = arith.truncf %320 : vector<8x16xf32> to vector<8x16xbf16>
    %cst_70 = arith.constant dense<0.000000e+00> : vector<8x16xf32>
    %336 = tpu.matmul %334, %335, %cst_70 {dimension_numbers = #tpu.dot_dimension_numbers<[1], [0], [0], [1], [0, 0, 1, 1], [], []>} : vector<8x8xbf16>, vector<8x16xbf16>, vector<8x16xf32> -> vector<8x16xf32>
    %337 = vector.extract_strided_slice %225 {offsets = [0, 48], sizes = [8, 16], strides = [1, 1]} : vector<8x192xf32> to vector<8x16xf32>
    %338 = vector.extract_strided_slice %337 {offsets = [0, 0], sizes = [8, 8], strides = [1, 1]} : vector<8x16xf32> to vector<8x8xf32>
    %339 = vector.extract_strided_slice %337 {offsets = [0, 8], sizes = [8, 8], strides = [1, 1]} : vector<8x16xf32> to vector<8x8xf32>
    %340 = arith.mulf %338, %2 : vector<8x8xf32>
    %341 = arith.mulf %339, %3 : vector<8x8xf32>
    %342 = arith.subf %340, %341 : vector<8x8xf32>
    %343 = arith.mulf %338, %3 : vector<8x8xf32>
    %344 = arith.mulf %339, %2 : vector<8x8xf32>
    %345 = arith.addf %343, %344 : vector<8x8xf32>
    %346 = tpu.concatenate %342, %345 in 1 : vector<8x8xf32>, vector<8x8xf32> -> vector<8x16xf32>
    %347 = vector.extract_strided_slice %225 {offsets = [0, 112], sizes = [8, 16], strides = [1, 1]} : vector<8x192xf32> to vector<8x16xf32>
    %348 = vector.extract_strided_slice %347 {offsets = [0, 0], sizes = [8, 8], strides = [1, 1]} : vector<8x16xf32> to vector<8x8xf32>
    %349 = vector.extract_strided_slice %347 {offsets = [0, 8], sizes = [8, 8], strides = [1, 1]} : vector<8x16xf32> to vector<8x8xf32>
    %350 = arith.mulf %348, %2 : vector<8x8xf32>
    %351 = arith.mulf %349, %3 : vector<8x8xf32>
    %352 = arith.subf %350, %351 : vector<8x8xf32>
    %353 = arith.mulf %348, %3 : vector<8x8xf32>
    %354 = arith.mulf %349, %2 : vector<8x8xf32>
    %355 = arith.addf %353, %354 : vector<8x8xf32>
    %356 = tpu.concatenate %352, %355 in 1 : vector<8x8xf32>, vector<8x8xf32> -> vector<8x16xf32>
    %357 = vector.extract_strided_slice %225 {offsets = [0, 176], sizes = [8, 16], strides = [1, 1]} : vector<8x192xf32> to vector<8x16xf32>
    %358 = arith.truncf %346 : vector<8x16xf32> to vector<8x16xbf16>
    %359 = arith.truncf %356 : vector<8x16xf32> to vector<8x16xbf16>
    %cst_71 = arith.constant dense<0.000000e+00> : vector<8x8xf32>
    %360 = tpu.matmul %358, %359, %cst_71 {dimension_numbers = #tpu.dot_dimension_numbers<[1], [1], [0], [0], [0, 0, 1, 0], [], []>} : vector<8x16xbf16>, vector<8x16xbf16>, vector<8x8xf32> -> vector<8x8xf32>
    %cst_72 = arith.constant dense<0xFF800000> : vector<8xf32>
    %361 = vector.multi_reduction <maximumf>, %360, %cst_72 [1] : vector<8x8xf32> to vector<8xf32>
    %362 = vector.shape_cast %361 : vector<8xf32> to vector<8x1xf32>
    %363 = vector.broadcast %362 : vector<8x1xf32> to vector<8x8xf32>
    %364 = arith.subf %360, %363 : vector<8x8xf32>
    %365 = math.exp %364 : vector<8x8xf32>
    %cst_73 = arith.constant dense<0.000000e+00> : vector<8xf32>
    %366 = vector.multi_reduction <add>, %365, %cst_73 [1] : vector<8x8xf32> to vector<8xf32>
    %367 = vector.shape_cast %366 : vector<8xf32> to vector<8x1xf32>
    %368 = tpu.reciprocal %367 {approx = true} : vector<8x1xf32> -> vector<8x1xf32>
    %369 = vector.broadcast %368 : vector<8x1xf32> to vector<8x8xf32>
    %370 = arith.mulf %365, %369 : vector<8x8xf32>
    %371 = arith.truncf %370 : vector<8x8xf32> to vector<8x8xbf16>
    %372 = arith.truncf %357 : vector<8x16xf32> to vector<8x16xbf16>
    %cst_74 = arith.constant dense<0.000000e+00> : vector<8x16xf32>
    %373 = tpu.matmul %371, %372, %cst_74 {dimension_numbers = #tpu.dot_dimension_numbers<[1], [0], [0], [1], [0, 0, 1, 1], [], []>} : vector<8x8xbf16>, vector<8x16xbf16>, vector<8x16xf32> -> vector<8x16xf32>
    %374 = tpu.concatenate %262, %299, %336, %373 in 1 : vector<8x16xf32>, vector<8x16xf32>, vector<8x16xf32>, vector<8x16xf32> -> vector<8x64xf32>
    %c1_75 = arith.constant 1 : index
    %c0_76 = arith.constant 0 : index
    %c0_77 = arith.constant 0 : index
    %375 = vector.load %arg6[%c1_75, %c0_76, %c0_77] : memref<2x64x64xbf16, #tpu.memory_space<vmem>>, vector<1x64x64xbf16>
    %376 = vector.shape_cast %375 : vector<1x64x64xbf16> to vector<64x64xbf16>
    %377 = arith.truncf %374 : vector<8x64xf32> to vector<8x64xbf16>
    %cst_78 = arith.constant dense<0.000000e+00> : vector<8x64xf32>
    %378 = tpu.matmul %377, %376, %cst_78 {dimension_numbers = #tpu.dot_dimension_numbers<[1], [0], [0], [1], [0, 0, 1, 1], [], []>} : vector<8x64xbf16>, vector<64x64xbf16>, vector<8x64xf32> -> vector<8x64xf32>
    %379 = arith.addf %207, %378 : vector<8x64xf32>
    %c1_79 = arith.constant 1 : index
    %c0_80 = arith.constant 0 : index
    %c0_81 = arith.constant 0 : index
    %380 = vector.load %arg7[%c1_79, %c0_80, %c0_81] : memref<2x1x64xf32, #tpu.memory_space<vmem>>, vector<1x1x64xf32>
    %381 = vector.shape_cast %380 : vector<1x1x64xf32> to vector<1x64xf32>
    %382 = arith.mulf %379, %379 : vector<8x64xf32>
    %cst_82 = arith.constant dense<0.000000e+00> : vector<8xf32>
    %383 = vector.multi_reduction <add>, %382, %cst_82 [1] : vector<8x64xf32> to vector<8xf32>
    %384 = vector.shape_cast %383 : vector<8xf32> to vector<8x1xf32>
    %cst_83 = arith.constant 6.400000e+01 : f32
    %385 = vector.broadcast %cst_83 : f32 to vector<8x1xf32>
    %386 = arith.divf %384, %385 : vector<8x1xf32>
    %cst_84 = arith.constant 9.99999997E-7 : f32
    %387 = vector.broadcast %cst_84 : f32 to vector<8x1xf32>
    %388 = arith.addf %386, %387 : vector<8x1xf32>
    %389 = math.rsqrt %388 : vector<8x1xf32>
    %390 = vector.broadcast %389 : vector<8x1xf32> to vector<8x64xf32>
    %391 = arith.mulf %379, %390 : vector<8x64xf32>
    %392 = vector.broadcast %381 : vector<1x64xf32> to vector<8x64xf32>
    %393 = arith.mulf %391, %392 : vector<8x64xf32>
    %c1_85 = arith.constant 1 : index
    %c0_86 = arith.constant 0 : index
    %c0_87 = arith.constant 0 : index
    %394 = vector.load %arg8[%c1_85, %c0_86, %c0_87] : memref<2x64x256xbf16, #tpu.memory_space<vmem>>, vector<1x64x256xbf16>
    %395 = vector.shape_cast %394 : vector<1x64x256xbf16> to vector<64x256xbf16>
    %396 = arith.truncf %393 : vector<8x64xf32> to vector<8x64xbf16>
    %cst_88 = arith.constant dense<0.000000e+00> : vector<8x256xf32>
    %397 = tpu.matmul %396, %395, %cst_88 {dimension_numbers = #tpu.dot_dimension_numbers<[1], [0], [0], [1], [0, 0, 1, 1], [], []>} : vector<8x64xbf16>, vector<64x256xbf16>, vector<8x256xf32> -> vector<8x256xf32>
    %398 = vector.extract_strided_slice %397 {offsets = [0, 0], sizes = [8, 128], strides = [1, 1]} : vector<8x256xf32> to vector<8x128xf32>
    %399 = vector.extract_strided_slice %397 {offsets = [0, 128], sizes = [8, 128], strides = [1, 1]} : vector<8x256xf32> to vector<8x128xf32>
    %400 = arith.negf %398 : vector<8x128xf32>
    %401 = math.exp %400 : vector<8x128xf32>
    %cst_89 = arith.constant 1.000000e+00 : f32
    %402 = vector.broadcast %cst_89 : f32 to vector<8x128xf32>
    %403 = arith.addf %402, %401 : vector<8x128xf32>
    %404 = arith.divf %402, %403 : vector<8x128xf32>
    %405 = arith.mulf %398, %404 : vector<8x128xf32>
    %406 = arith.mulf %405, %399 : vector<8x128xf32>
    %c1_90 = arith.constant 1 : index
    %c0_91 = arith.constant 0 : index
    %c0_92 = arith.constant 0 : index
    %407 = vector.load %arg9[%c1_90, %c0_91, %c0_92] : memref<2x128x64xbf16, #tpu.memory_space<vmem>>, vector<1x128x64xbf16>
    %408 = vector.shape_cast %407 : vector<1x128x64xbf16> to vector<128x64xbf16>
    %409 = arith.truncf %406 : vector<8x128xf32> to vector<8x128xbf16>
    %cst_93 = arith.constant dense<0.000000e+00> : vector<8x64xf32>
    %410 = tpu.matmul %409, %408, %cst_93 {dimension_numbers = #tpu.dot_dimension_numbers<[1], [0], [0], [1], [0, 0, 1, 1], [], []>} : vector<8x128xbf16>, vector<128x64xbf16>, vector<8x64xf32> -> vector<8x64xf32>
    %411 = arith.addf %379, %410 : vector<8x64xf32>
    %c0_94 = arith.constant 0 : index
    %c0_95 = arith.constant 0 : index
    %412 = vector.load %arg10[%c0_94, %c0_95] : memref<1x64xf32, #tpu.memory_space<vmem>>, vector<1x64xf32>
    %413 = arith.mulf %411, %411 : vector<8x64xf32>
    %cst_96 = arith.constant dense<0.000000e+00> : vector<8xf32>
    %414 = vector.multi_reduction <add>, %413, %cst_96 [1] : vector<8x64xf32> to vector<8xf32>
    %415 = vector.shape_cast %414 : vector<8xf32> to vector<8x1xf32>
    %cst_97 = arith.constant 6.400000e+01 : f32
    %416 = vector.broadcast %cst_97 : f32 to vector<8x1xf32>
    %417 = arith.divf %415, %416 : vector<8x1xf32>
    %cst_98 = arith.constant 9.99999997E-7 : f32
    %418 = vector.broadcast %cst_98 : f32 to vector<8x1xf32>
    %419 = arith.addf %417, %418 : vector<8x1xf32>
    %420 = math.rsqrt %419 : vector<8x1xf32>
    %421 = vector.broadcast %420 : vector<8x1xf32> to vector<8x64xf32>
    %422 = arith.mulf %411, %421 : vector<8x64xf32>
    %423 = vector.broadcast %412 : vector<1x64xf32> to vector<8x64xf32>
    %424 = arith.mulf %422, %423 : vector<8x64xf32>
    %c0_99 = arith.constant 0 : index
    %c0_100 = arith.constant 0 : index
    %425 = vector.load %arg11[%c0_99, %c0_100] : memref<64x256xbf16, #tpu.memory_space<vmem>>, vector<64x256xbf16>
    %426 = arith.truncf %424 : vector<8x64xf32> to vector<8x64xbf16>
    %cst_101 = arith.constant dense<0.000000e+00> : vector<8x256xf32>
    %427 = tpu.matmul %426, %425, %cst_101 {dimension_numbers = #tpu.dot_dimension_numbers<[1], [0], [0], [1], [0, 0, 1, 1], [], []>} : vector<8x64xbf16>, vector<64x256xbf16>, vector<8x256xf32> -> vector<8x256xf32>
    %c0_102 = arith.constant 0 : index
    %c0_103 = arith.constant 0 : index
    %c0_104 = arith.constant 0 : index
    %428 = vector.load %arg12[%c0_102, %c0_103, %c0_104] : memref<1x8x256xf32, #tpu.memory_space<vmem>>, vector<1x8x256xf32>
    %429 = vector.shape_cast %428 : vector<1x8x256xf32> to vector<8x256xf32>
    %430 = vector.shape_cast %427 : vector<8x256xf32> to vector<1x8x256xf32>
    tpu.vector_store %arg12[%c0_102, %c0_103, %c0_104], %430 {strides = array<i32>} : memref<1x8x256xf32, #tpu.memory_space<vmem>>, vector<1x8x256xf32>,
    return
  }
  func.func @transform_0(%arg0: i32) -> (i32, i32, i32) {
    %c0_i32 = arith.constant 0 : i32
    %c0_i32_0 = arith.constant 0 : i32
    %c0_i32_1 = arith.constant 0 : i32
    return %arg0, %c0_i32, %c0_i32_0 : i32, i32, i32
  }
  func.func @transform_1(%arg0: i32) -> (i32, i32) {
    %c0_i32 = arith.constant 0 : i32
    %c0_i32_0 = arith.constant 0 : i32
    %c0_i32_1 = arith.constant 0 : i32
    return %c0_i32, %c0_i32_0 : i32, i32
  }
  func.func @transform_2(%arg0: i32) -> (i32, i32) {
    %c0_i32 = arith.constant 0 : i32
    %c0_i32_0 = arith.constant 0 : i32
    %c0_i32_1 = arith.constant 0 : i32
    return %c0_i32, %c0_i32_0 : i32, i32
  }
  func.func @transform_3(%arg0: i32) -> (i32, i32, i32) {
    %c0_i32 = arith.constant 0 : i32
    %c0_i32_0 = arith.constant 0 : i32
    %c0_i32_1 = arith.constant 0 : i32
    %c0_i32_2 = arith.constant 0 : i32
    return %c0_i32, %c0_i32_0, %c0_i32_1 : i32, i32, i32
  }
  func.func @transform_4(%arg0: i32) -> (i32, i32, i32) {
    %c0_i32 = arith.constant 0 : i32
    %c0_i32_0 = arith.constant 0 : i32
    %c0_i32_1 = arith.constant 0 : i32
    %c0_i32_2 = arith.constant 0 : i32
    return %c0_i32, %c0_i32_0, %c0_i32_1 : i32, i32, i32
  }
  func.func @transform_5(%arg0: i32) -> (i32, i32, i32) {
    %c0_i32 = arith.constant 0 : i32
    %c0_i32_0 = arith.constant 0 : i32
    %c0_i32_1 = arith.constant 0 : i32
    %c0_i32_2 = arith.constant 0 : i32
    return %c0_i32, %c0_i32_0, %c0_i32_1 : i32, i32, i32
  }
  func.func @transform_6(%arg0: i32) -> (i32, i32, i32) {
    %c0_i32 = arith.constant 0 : i32
    %c0_i32_0 = arith.constant 0 : i32
    %c0_i32_1 = arith.constant 0 : i32
    %c0_i32_2 = arith.constant 0 : i32
    return %c0_i32, %c0_i32_0, %c0_i32_1 : i32, i32, i32
  }
  func.func @transform_7(%arg0: i32) -> (i32, i32, i32) {
    %c0_i32 = arith.constant 0 : i32
    %c0_i32_0 = arith.constant 0 : i32
    %c0_i32_1 = arith.constant 0 : i32
    %c0_i32_2 = arith.constant 0 : i32
    return %c0_i32, %c0_i32_0, %c0_i32_1 : i32, i32, i32
  }
  func.func @transform_8(%arg0: i32) -> (i32, i32, i32) {
    %c0_i32 = arith.constant 0 : i32
    %c0_i32_0 = arith.constant 0 : i32
    %c0_i32_1 = arith.constant 0 : i32
    %c0_i32_2 = arith.constant 0 : i32
    return %c0_i32, %c0_i32_0, %c0_i32_1 : i32, i32, i32
  }
  func.func @transform_9(%arg0: i32) -> (i32, i32) {
    %c0_i32 = arith.constant 0 : i32
    %c0_i32_0 = arith.constant 0 : i32
    %c0_i32_1 = arith.constant 0 : i32
    return %c0_i32, %c0_i32_0 : i32, i32
  }
  func.func @transform_10(%arg0: i32) -> (i32, i32) {
    %c0_i32 = arith.constant 0 : i32
    %c0_i32_0 = arith.constant 0 : i32
    %c0_i32_1 = arith.constant 0 : i32
    return %c0_i32, %c0_i32_0 : i32, i32
  }
  func.func @transform_11(%arg0: i32) -> (i32, i32, i32) {
    %c0_i32 = arith.constant 0 : i32
    %c0_i32_0 = arith.constant 0 : i32
    %c0_i32_1 = arith.constant 0 : i32
    return %arg0, %c0_i32, %c0_i32_0 : i32, i32, i32
  }
}

</mosaic_0001>

<bundles_post_ra>
// kernel: transformer_forward.1
= control target key start
LH: loop header
LB: loop body
LE: loop exit
PB: predicated region body
PF: predicated region fallthrough
CT: control target
= control target key end

     0   :  { %s4314_s0 = inlined_call_operand.vmem [shape: f32[2,8,64], index: 0, kind: input, shape index: {}]   ;;  %s4315_s1 = inlined_call_operand.vmem [shape: f32[8,8], index: 1, kind: input, shape index: {}]   ;;  %s4316_s2 = inlined_call_operand.vmem [shape: f32[8,8], index: 2, kind: input, shape index: {}]   ;;  %s4317_s3 = inlined_call_operand.vmem [shape: f32[2,1,64], index: 3, kind: input, shape index: {}]   ;;  %s4318_s4 = inlined_call_operand.vmem [shape: bf16[2,64,192], index: 4, kind: input, shape index: {}]   ;;  %s4319_s5 = inlined_call_operand.vmem [shape: bf16[2,64,64], index: 5, kind: input, shape index: {}]   ;;  %s4320_s6 = inlined_call_operand.vmem [shape: f32[2,1,64], index: 6, kind: input, shape index: {}]   ;;  %s4321_s7 = inlined_call_operand.vmem [shape: bf16[2,64,256], index: 7, kind: input, shape index: {}]   ;;  %s4322_s8 = inlined_call_operand.vmem [shape: bf16[2,128,64], index: 8, kind: input, shape index: {}]   ;;  %s4323_s9 = inlined_call_operand.vmem [shape: f32[1,64], index: 9, kind: input, shape index: {}]   ;;  %s4324_s10 = inlined_call_operand.vmem [shape: bf16[64,256], index: 10, kind: input, shape index: {}]   ;;  %s4325_s11 = inlined_call_operand.hbm [shape: f32[2,8,256], index: 11, kind: output, shape index: {}]  }
   0x1   :  { %4350 = sst [smem:[#allocation7_spill]] %s4314_s0 }
   0x2   :  { %16 = vsyncpa [#allocation3], 0 }
   0x3   :  { %18 = vsyncpa [#allocation3 + $0x1], 0  ;;  %s3450_s17 = smov 0   ;;  %s3452_s18 = smov 0  }
   0x4   :  { %s3454_s19 = smov 0   ;;  %s3456_s20 = smov 0  }
   0x5 LB: > { %4351 = sst [smem:[#allocation5_spill]] %s3365_s19  ;;  %s3471_s21 = sadd.s32 4294967295, %s3369_s20   ;;  %s3369_s20 = sphi %s3456_s20, %s4375_s20   ;;  %s3365_s19 = sphi %s3454_s19, %s4372_s19   ;;  %s3361_s18 = sphi %s3452_s18, %s4374_s18   ;;  %s3357_s17 = sphi %s3450_s17, %s4373_s17  }
   0x6   : > { %s2748_s22 = sadd.s32 4294967294, %s3369_s20   ;;  %s3475_s23 = sadd.s32 1, %s3369_s20  }
   0x7   : > { %s267_s24 = sadd.s32 1, %s3365_s19  ;;  %s264_s25 = ssub.s32 %s3369_s20, %s3475_s23 }
   0x8   : > { %p277_p0 = scmp.ne.s32.totalorder %s3365_s19, %s3361_s18  ;;  %p265_p1 = scmp.eq.s32.totalorder %s264_s25, 0 }
   0x9   : > { %p278_p2 = scmp.eq.s32.totalorder %s3471_s21, 1  ;;  %p283_p3 = scmp.ne.s32.totalorder %s3361_s18, %s3357_s17 }
   0xa   : > { %p284_p4 = scmp.eq.s32.totalorder %s2748_s22, 1  ;;  %p2751_p7 = scmp.ge.s32.totalorder %s3369_s20, 1 }
   0xb   : > { %s3486_s26 = scalar_select %p265_p1, %s3365_s19, %s267_s24  }
   0xc   : > { %p3488_p5 = por %p278_p2, %p277_p0  ;;  %p3492_p6 = por %p284_p4, %p283_p3 }
   0xd   : > { %4352 = sst [smem:[#allocation6_spill]] %s3486_s26  ;;  %p339_p8 = scmp.lt.s32.totalorder %s3369_s20, 3 }
   0xf   : > { %p340_p9 = pnand %p2751_p7, %p339_p8 }
  0x10   : > { %p378_p10 = scmp.lt.s32.totalorder (!%p340_p9), %s3471_s21, 1  ;;  %s4355_s0 = sld [smem:[#allocation7_spill]] (!%p340_p9) }
  0x11   : > { %343 = sbr.rel (%p340_p9) target bundleno = 5411 (0x1523), region = 64  ;;  %s4327_s15 = smov (!%p340_p9), 72  }
  0x12   : > { %s4326_s16 = smov (!%p340_p9), 8   ;;  %s4328_s22 = smov (!%p340_p9), 64  }
  0x13   : > { %s4340_s12 = smov (!%p340_p9), 56   ;;  %s4335_s13 = smov (!%p340_p9), 24  }
  0x14   : > { %s4333_s24 = smov (!%p340_p9), 40   ;;  %s4331_s25 = smov (!%p340_p9), 80  }
  0x15   : > { %s4362_s19 = smov (!%p340_p9), 8   ;;  %s4363_s26 = smov (!%p340_p9), 56  }
  0x16   : > { %s379_s29 = scalar_select %p378_p10, %s3471_s21, 1  ;;  %vm388_vm0 = vcmask 523264   ;;  %v3173_v3 = vld [vmem:[%s4318_s4 + $0x34] ss:$8 sps:$4 sm:$0xff]   ;;  %v3175_v4 = vld [vmem:[%s4318_s4 + $0x30] ss:$8 sps:$4 sm:$0xff]  }
  0x17   : > { %v3176_v5 = vld [vmem:[%s4318_s4 + $0x24] ss:$8 sps:$4 sm:$0xff]   ;;  %464 = vmatprep.subr.bf16.mxu0 %v3173_v3  ;;  %v3178_v6 = vld [vmem:[%s4318_s4 + $0x20] ss:$8 sps:$4 sm:$0xff]   ;;  %v3179_v7 = vld [vmem:[%s4318_s4 + $0x14] ss:$8 sps:$4 sm:$0xff]  }
  0x18   : > { %s2753_s30 = sshll.u32 %s379_s29, 3  ;;  %465 = vmatpush1.bf16.msra.mxu0 %v3175_v4  ;;  %v3371_v8 = vmov 0   ;;  %v3181_v9 = vld [vmem:[%s4318_s4 + $0x10] ss:$8 sps:$4 sm:$0xff]   ;;  %v3182_v10 = vld [vmem:[%s4318_s4 + $0x4] ss:$8 sps:$4 sm:$0xff]  }
  0x19   : > { %s381_s14 = scalar_lea.vmem %s4355_s0, %s2753_s30  ;;  %488 = vmatprep.mubr.bf16.mxu0 %v3371_v8  ;;  %466 = vmatprep.subr.bf16.mxu0 %v3176_v5  ;;  %v3184_v11 = vld [vmem:[%s4318_s4] ss:$8 sps:$4 sm:$0xff]   ;;  %s4341_s29 = smov 120   ;;  %v3376_v34 = vmov 0.0   ;;  %vm3377_vm1 = vmmov 0   ;;  %vm523_vm2 = vcmask 64512  }
  0x1a   : > { %v3503_v0 = vld [vmem:[%s381_s14] sm:$0xff]  ;;  %2956 = vmatprep.subr.bf16.mxu1 %v3376_v34  ;;  %2958 = vmatprep.mubr.msk.bf16.mxu1 %vm3377_vm1, %v3376_v34  ;;  %s4329_s30 = smov 88   ;;  %s4334_s14 = smov 104   ;;  %vm562_vm3 = vcmask 130048   ;;  %vm625_vm4 = vcmask 1043456   ;;  %vm1217_vm5 = vcmask 261120  }
  0x1b   : > { %v387_v1 = vmul.f32 %v3503_v0, %v3503_v0  ;;  %v3536_v12 = vld [vmem:[%s4315_s1] sm:$0xff]  ;;  %vm1219_vm6 = vcmask 392192  }
  0x1c   : > { %467 = vmatpush1.bf16.msra.mxu0 %v3178_v6  ;;  %v3541_v13 = vld [vmem:[%s4316_s2] sm:$0xff]  ;;  %542 = vrot.lane.b32.xlu1 %v3536_v12, %s4327_s15 }
  0x1d   : > { %v389_v2 = vsel %vm388_vm0, %v387_v1, 0.0  ;;  %468 = vmatprep.subr.bf16.mxu0 %v3179_v7  ;;  %v2754_v18 = vld [vmem:[%s4317_s3] ss:$0 sm:$0xff] }
  0x1e   : > { %390 = vadd.xlane.f32.xlu0 %v389_v2 }
  0x20   : > { %469 = vmatpush1.bf16.msra.mxu0 %v3181_v9  ;;  %510 = vrot.lane.b32.xlu1 %v3536_v12, %s4326_s16 }
  0x21   : > { %470 = vmatprep.subr.bf16.mxu0 %v3182_v10 }
  0x24   : > { %471 = vmatpush1.bf16.msra.mxu0 %v3184_v11  ;;  %525 = vrot.lane.b32.xlu1 %v3536_v12, %s4328_s22 }
  0x25   : > { %2980 = vmatprep.subr.bf16.mxu0 %v3376_v34 }
  0x28   : > { %538 = vrot.lane.b32.xlu1 %v3541_v13, %s4328_s22 }
  0x34   : > { %529 = vrot.lane.b32.xlu0 %v3541_v13, %s4327_s15 }
  0x8e   : > { %v3558_v22 = vpop.permute.xlu1 %542 }
  0x92   : > { %v3562_v24 = vpop.permute.xlu1 %510 }
  0x96   : > { %v3579_v32 = vpop.permute.xlu1 %525 }
  0x9a   : > { %v3581_v33 = vpop.permute.xlu1 %538 }
  0xa7   : > { %v391_v14 = vpop.xlane.xlu0 %390 }
  0xa8   : > { %v393_v15 = vmul.f32 0.015625, %v391_v14 }
  0xaa   : > { %v394_v16 = vadd.f32 1e-06, %v393_v15 }
  0xab   : > { %v3560_v23 = vpop.permute.xlu0 %529 }
  0xac   : > { %3257 = vrsqrt.f32 %v394_v16 }
  0xb9   : > { %v3258_v17 = vpop.eup %3257 }
  0xba   : > { %v396_v19 = vmul.f32 %v3258_v17, %v3503_v0 }
  0xbc   : > { %v403_v20 = vmul.f32 %v2754_v18, %v396_v19 }
  0xbe   : > { %v412_v21 = vpack.c.bf16 %v403_v20, %v403_v20 }
  0xc0   : > { %2763 = vmatmul.mubr.msk.bf16.vlgmr.msra.gmra.mxu0 %vm388_vm0, %v412_v21 }
  0xc1   : > { %2982 = vmatprep.mubr.msk.bf16.mxu0 %vm3377_vm1, %v3376_v34 }
 0x180   : > { %v3564_v25 = vpop.f32.mrf.mxu0 }
 0x181   : > { %v532_v26 = vmul.f32 %v3560_v23, %v3564_v25  ;;  %v513_v27 = vmul.f32 %v3562_v24, %v3564_v25  ;;  %v545_v30 = vmul.f32 %v3558_v22, %v3564_v25  ;;  %v528_v35 = vmul.f32 %v3579_v32, %v3564_v25 }
 0x182   : > { %v3570_v28 = vpop.f32.mrf.mxu0  ;;  %v541_v38 = vmul.f32 %v3581_v33, %v3564_v25  ;;  %v508_v42 = vmul.f32 %v3564_v25, %v3541_v13  ;;  %v497_v50 = vmul.f32 %v3564_v25, %v3536_v12 }
 0x183   : > { %515 = vrot.lane.b32.xlu0 %v513_v27, %s4341_s29  ;;  %534 = vrot.lane.b32.xlu1 %v532_v26, %s4341_s29  ;;  %v3639_v56 = vpack.c.bf16 %v3570_v28, %v3570_v28 }
 0x184   : > { %v494_v29 = vpop.f32.mrf.mxu0 }
 0x185   : > { %v627_v62 = vsel %vm625_vm4, %v3639_v56, 0 }
 0x186   : > { %v495_v31 = vpop.f32.mrf.mxu0 }
 0x187   : > { %547 = vrot.lane.b32.xlu1 %v545_v30, %s4341_s29 }
 0x18b   : > { %499 = vrot.lane.b32.xlu1 %v3541_v13, %s4326_s16 }
 0x1f5   : > { %v535_v36 = vpop.permute.xlu1 %534  ;;  %v516_v41 = vpop.permute.xlu0 %515 }
 0x1f6   : > { %v537_v37 = vsub.f32 %v528_v35, %v535_v36  ;;  %v518_v44 = vadd.f32 %v516_v41, %v508_v42 }
 0x1f8   : > { %552 = vrot.lane.b32.xlu1 %v537_v37, %s4328_s22  ;;  %s4347_s22 = smov 32  }
 0x1f9   : > { %v548_v39 = vpop.permute.xlu1 %547 }
 0x1fa   : > { %v550_v40 = vadd.f32 %v548_v39, %v541_v38 }
 0x1fc   : > { %556 = vrot.lane.b32.xlu0 %v550_v40, %s4327_s15  ;;  %s4336_s15 = smov 96  }
 0x1fd   : > { %v3597_v43 = vpop.permute.xlu1 %499 }
 0x1fe   : > { %v502_v45 = vmul.f32 %v3597_v43, %v3564_v25 }
 0x200   : > { %504 = vrot.lane.b32.xlu1 %v502_v45, %s4341_s29  ;;  %520 = vrot.lane.b32.xlu0 %v518_v44, %s4326_s16  ;;  %s4345_s16 = smov 16  }
 0x204   : > { %708 = vrot.lane.b32.xlu1 %v3541_v13, %s4329_s30  ;;  %721 = vrot.lane.b32.xlu0 %v3536_v12, %s4329_s30  ;;  %s4338_s30 = smov 112  }
 0x208   : > { %1043 = vrot.lane.b32.xlu1 %v3536_v12, %s4340_s12  ;;  %673 = vrot.lane.b32.xlu0 %v3541_v13, %s4335_s13 }
 0x20c   : > { %686 = vrot.lane.b32.xlu0 %v3536_v12, %s4335_s13 }
 0x210   : > { %887 = vrot.lane.b32.xlu0 %v3541_v13, %s4334_s14 }
 0x214   : > { %900 = vrot.lane.b32.xlu0 %v3536_v12, %s4334_s14 }
 0x218   : > { %852 = vrot.lane.b32.xlu0 %v3541_v13, %s4333_s24 }
 0x21c   : > { %865 = vrot.lane.b32.xlu0 %v3536_v12, %s4333_s24 }
 0x220   : > { %1065 = vrot.lane.b32.xlu0 %v3541_v13, %s4341_s29 }
 0x224   : > { %1078 = vrot.lane.b32.xlu0 %v3536_v12, %s4341_s29 }
 0x228   : > { %1030 = vrot.lane.b32.xlu0 %v3541_v13, %s4340_s12 }
 0x22c   : > { %704 = vrot.lane.b32.xlu0 %v3536_v12, %s4331_s25 }
 0x230   : > { %717 = vrot.lane.b32.xlu0 %v3541_v13, %s4331_s25  ;;  %s4343_s25 = smov 48  }
 0x26a   : > { %v553_v46 = vpop.permute.xlu1 %552 }
 0x26e   : > { %v557_v47 = vpop.permute.xlu0 %556 }
 0x26f   : > { %v559_v48 = vsel %vm523_vm2, %v553_v46, %v557_v47 }
 0x270   : > { %v561_v49 = vpack.c.bf16 %v559_v48, %v559_v48 }
 0x272   : > { %v505_v51 = vpop.permute.xlu1 %504  ;;  %v521_v52 = vpop.permute.xlu0 %520  ;;  %v567_v53 = vsel %vm562_vm3, %v561_v49, 0 }
 0x273   : > { %v507_v54 = vsub.f32 %v497_v50, %v505_v51  ;;  %2957 = vmatpush3.bf16.xpose.msra.mxu1 %v567_v53 }
 0x274   : > { %2962 = vmatprep.subr.bf16.mxu1 %v3376_v34 }
 0x275   : > { %v524_v55 = vsel %vm523_vm2, %v507_v54, %v521_v52 }
 0x276   : > { %v3641_v57 = vpop.permute.xlu1 %708  ;;  %v3643_v58 = vpop.permute.xlu0 %721  ;;  %v560_v60 = vpack.c.bf16 %v524_v55, %v524_v55 }
 0x277   : > { %v711_v59 = vmul.f32 %v3641_v57, %v3564_v25  ;;  %v724_v63 = vmul.f32 %v3643_v58, %v3564_v25 }
 0x279   : > { %713 = vrot.lane.b32.xlu0 %v711_v59, %s4341_s29 }
 0x27a   : > { %2959 = vmatmul.mubr.msk.bf16.vlgmr.msra.gmra.mxu1 %vm562_vm3, %v560_v60  ;;  %v3649_v61 = vpop.permute.xlu0 %673  ;;  %v3693_v15 = vpop.permute.xlu1 %1043 }
 0x27b   : > { %2963 = vmatpush3.bf16.msra.mxu1 %v627_v62  ;;  %2964 = vmatprep.mubr.msk.bf16.mxu1 %vm3377_vm1, %v3376_v34  ;;  %v1046_v16 = vmul.f32 %v3693_v15, %v3564_v25  ;;  %v676_v37 = vmul.f32 %v3649_v61, %v3564_v25 }
 0x27c   : > { %2968 = vmatprep.subr.bf16.mxu1 %v3376_v34 }
 0x27d   : > { %726 = vrot.lane.b32.xlu0 %v724_v63, %s4341_s29 }
 0x27e   : > { %v3659_v1 = vpop.permute.xlu0 %686 }
 0x27f   : > { %v689_v4 = vmul.f32 %v3659_v1, %v3564_v25 }
 0x281   : > { %682 = vrot.lane.b32.xlu0 %v3541_v13, %s4345_s16 }
 0x282   : > { %v3663_v2 = vpop.permute.xlu0 %887 }
 0x283   : > { %v890_v38 = vmul.f32 %v3663_v2, %v3564_v25 }
 0x285   : > { %896 = vrot.lane.b32.xlu0 %v3541_v13, %s4336_s15 }
 0x286   : > { %v3667_v3 = vpop.permute.xlu0 %900 }
 0x287   : > { %v903_v6 = vmul.f32 %v3667_v3, %v3564_v25 }
 0x289   : > { %691 = vrot.lane.b32.xlu0 %v689_v4, %s4341_s29 }
 0x28a   : > { %v3672_v5 = vpop.permute.xlu0 %852 }
 0x28b   : > { %v855_v39 = vmul.f32 %v3672_v5, %v3564_v25 }
 0x28d   : > { %905 = vrot.lane.b32.xlu0 %v903_v6, %s4341_s29 }
 0x28e   : > { %v3677_v7 = vpop.permute.xlu0 %865 }
 0x28f   : > { %v868_v10 = vmul.f32 %v3677_v7, %v3564_v25 }
 0x291   : > { %861 = vrot.lane.b32.xlu0 %v3541_v13, %s4347_s22 }
 0x292   : > { %v3681_v9 = vpop.permute.xlu0 %1065 }
 0x293   : > { %v1068_v40 = vmul.f32 %v3681_v9, %v3564_v25 }
 0x295   : > { %1074 = vrot.lane.b32.xlu0 %v3541_v13, %s4338_s30 }
 0x296   : > { %v3687_v11 = vpop.permute.xlu0 %1078 }
 0x297   : > { %v1081_v14 = vmul.f32 %v3687_v11, %v3564_v25 }
 0x299   : > { %870 = vrot.lane.b32.xlu0 %v868_v10, %s4341_s29 }
 0x29a   : > { %v3700_v17 = vpop.permute.xlu0 %1030 }
 0x29b   : > { %v1033_v41 = vmul.f32 %v3700_v17, %v3564_v25 }
 0x29d   : > { %1083 = vrot.lane.b32.xlu0 %v1081_v14, %s4341_s29 }
 0x29e   : > { %v3702_v18 = vpop.permute.xlu0 %704 }
 0x29f   : > { %v707_v20 = vmul.f32 %v3702_v18, %v3564_v25 }
 0x2a1   : > { %1039 = vrot.lane.b32.xlu0 %v3541_v13, %s4343_s25 }
 0x2a2   : > { %v3704_v19 = vpop.permute.xlu0 %717 }
 0x2a3   : > { %v720_v27 = vmul.f32 %v3704_v19, %v3564_v25 }
 0x2a5   : > { %1048 = vrot.lane.b32.xlu0 %v1046_v16, %s4341_s29 }
 0x2eb   : > { %v714_v21 = vpop.permute.xlu0 %713 }
 0x2ec   : > { %v716_v26 = vsub.f32 %v707_v20, %v714_v21 }
 0x2ee   : > { %731 = vrot.lane.b32.xlu0 %v716_v26, %s4343_s25 }
 0x2ef   : > { %v727_v13 = vpop.permute.xlu0 %726 }
 0x2f0   : > { %v729_v28 = vadd.f32 %v727_v13, %v720_v27 }
 0x2f2   : > { %735 = vrot.lane.b32.xlu0 %v729_v28, %s4340_s12  ;;  %s4366_s12 = smov 32  }
 0x2f3   : > { %v3738_v42 = vpop.permute.xlu0 %682 }
 0x2f4   : > { %v685_v55 = vmul.f32 %v3738_v42, %v3564_v25 }
 0x2f7   : > { %v3740_v44 = vpop.permute.xlu0 %896 }
 0x2f8   : > { %v899_v16 = vmul.f32 %v3740_v44, %v3564_v25 }
 0x2fb   : > { %v692_v45 = vpop.permute.xlu0 %691 }
 0x2fc   : > { %v694_v60 = vadd.f32 %v692_v45, %v685_v55 }
 0x2ff   : > { %v906_v50 = vpop.permute.xlu0 %905 }
 0x300   : > { %v908_v26 = vadd.f32 %v906_v50, %v899_v16 }
 0x303   : > { %v3748_v52 = vpop.permute.xlu0 %861 }
 0x307   : > { %v3755_v63 = vpop.permute.xlu0 %1074 }
 0x30b   : > { %v871_v20 = vpop.permute.xlu0 %870 }
 0x33a   : > { %v603_v29 = vpop.f32.mrf.mxu1 }
 0x33b   : > { %v609_v30 = vsel %vm523_vm2, %v603_v29, -inf }
 0x33c   : > { %610 = vmax.xlane.f32.xlu1 %v609_v30  ;;  %v2960_v31 = vpop.f32.mrf.mxu1  ;;  %v864_v30 = vmul.f32 %v3748_v52, %v3564_v25 }
 0x33e   : > { %v606_v35 = vpop.f32.mrf.mxu1 }
 0x33f   : > { %v1077_v35 = vmul.f32 %v3755_v63, %v3564_v25 }
 0x340   : > { %v2961_v36 = vpop.f32.mrf.mxu1 }
 0x341   : > { %v873_v36 = vadd.f32 %v871_v20, %v864_v30 }
 0x34d   : > { %669 = vrot.lane.b32.xlu1 %v3536_v12, %s4345_s16 }
 0x351   : > { %883 = vrot.lane.b32.xlu1 %v3536_v12, %s4336_s15 }
 0x355   : > { %678 = vrot.lane.b32.xlu1 %v676_v37, %s4341_s29 }
 0x359   : > { %892 = vrot.lane.b32.xlu1 %v890_v38, %s4341_s29 }
 0x35d   : > { %848 = vrot.lane.b32.xlu1 %v3536_v12, %s4347_s22 }
 0x361   : > { %1061 = vrot.lane.b32.xlu1 %v3536_v12, %s4338_s30 }
 0x365   : > { %857 = vrot.lane.b32.xlu1 %v855_v39, %s4341_s29 }
 0x369   : > { %1070 = vrot.lane.b32.xlu1 %v1068_v40, %s4341_s29 }
 0x36d   : > { %1026 = vrot.lane.b32.xlu1 %v3536_v12, %s4343_s25  ;;  %s4359_s25 = smov 120  }
 0x371   : > { %1035 = vrot.lane.b32.xlu1 %v1033_v41, %s4341_s29 }
 0x3c5   : > { %v611_v46 = vpop.xlane.xlu1 %610 }
 0x3c6   : > { %v612_v47 = vsub.f32 %v603_v29, %v611_v46  ;;  %v1084_v29 = vpop.permute.xlu0 %1083 }
 0x3c7   : > { %v1086_v37 = vadd.f32 %v1084_v29, %v1077_v35 }
 0x3c8   : > { %v613_v48 = vmul.f32 1.442695, %v612_v47 }
 0x3c9   : > { %v3742_v49 = vpop.permute.xlu1 %669 }
 0x3ca   : > { %3259 = vpow2.f32 %v613_v48  ;;  %v672_v12 = vmul.f32 %v3742_v49, %v3564_v25  ;;  %v3780_v39 = vpop.permute.xlu0 %1039 }
 0x3cb   : > { %v1042_v50 = vmul.f32 %v3780_v39, %v3564_v25 }
 0x3cd   : > { %v3744_v51 = vpop.permute.xlu1 %883 }
 0x3ce   : > { %v886_v4 = vmul.f32 %v3744_v51, %v3564_v25  ;;  %v1049_v48 = vpop.permute.xlu0 %1048 }
 0x3d1   : > { %v679_v53 = vpop.permute.xlu1 %678 }
 0x3d2   : > { %v681_v54 = vsub.f32 %v672_v12, %v679_v53  ;;  %v1051_v12 = vadd.f32 %v1049_v48, %v1042_v50  ;;  %v732_v53 = vpop.permute.xlu0 %731 }
 0x3d4   : > { %696 = vrot.lane.b32.xlu0 %v681_v54, %s4338_s30 }
 0x3d5   : > { %v893_v59 = vpop.permute.xlu1 %892 }
 0x3d6   : > { %v895_v14 = vsub.f32 %v886_v4, %v893_v59  ;;  %v736_v54 = vpop.permute.xlu0 %735 }
 0x3d7   : > { %v3753_v62 = vpop.eup %3259 }
 0x3d8   : > { %700 = vrot.lane.b32.xlu0 %v694_v60, %s4341_s29  ;;  %v615_v6 = vsel %vm523_vm2, %v3753_v62, 0.0  ;;  %s4358_s29 = smov 48  }
 0x3d9   : > { %v3762_v10 = vpop.permute.xlu1 %848  ;;  %616 = vadd.xlane.f32.xlu1 %v615_v6 }
 0x3da   : > { %v851_v27 = vmul.f32 %v3762_v10, %v3564_v25 }
 0x3dc   : > { %910 = vrot.lane.b32.xlu0 %v895_v14, %s4347_s22 }
 0x3dd   : > { %v3767_v21 = vpop.permute.xlu1 %1061 }
 0x3de   : > { %v1064_v38 = vmul.f32 %v3767_v21, %v3564_v25 }
 0x3e0   : > { %914 = vrot.lane.b32.xlu0 %v908_v26, %s4333_s24  ;;  %s4356_s24 = smov 80  }
 0x3e1   : > { %v858_v13 = vpop.permute.xlu1 %857 }
 0x3e2   : > { %v860_v28 = vsub.f32 %v851_v27, %v858_v13 }
 0x3e4   : > { %875 = vrot.lane.b32.xlu0 %v860_v28, %s4336_s15 }
 0x3e5   : > { %v1071_v31 = vpop.permute.xlu1 %1070 }
 0x3e6   : > { %v1073_v41 = vsub.f32 %v1064_v38, %v1071_v31 }
 0x3e8   : > { %879 = vrot.lane.b32.xlu0 %v873_v36, %s4334_s14  ;;  %s4357_s14 = smov 88  }
 0x3e9   : > { %v3782_v40 = vpop.permute.xlu1 %1026 }
 0x3ea   : > { %1092 = vrot.lane.b32.xlu1 %v1086_v37, %s4335_s13  ;;  %v1029_v45 = vmul.f32 %v3782_v40, %v3564_v25  ;;  %s4370_s13 = smov 16  }
 0x3ec   : > { %1088 = vrot.lane.b32.xlu0 %v1073_v41, %s4345_s16  ;;  %v738_v41 = vsel %vm523_vm2, %v732_v53, %v736_v54 }
 0x3ed   : > { %v1036_v46 = vpop.permute.xlu1 %1035 }
 0x3ee   : > { %v1038_v47 = vsub.f32 %v1029_v45, %v1036_v46 }
 0x3f0   : > { %1053 = vrot.lane.b32.xlu0 %v1038_v47, %s4356_s24  ;;  %v740_v47 = vpack.c.bf16 %v738_v41, %v738_v41 }
 0x3f4   : > { %1057 = vrot.lane.b32.xlu0 %v1051_v12, %s4357_s14  ;;  %v745_v12 = vsel %vm562_vm3, %v740_v47, 0 }
 0x446   : > { %v697_v55 = vpop.permute.xlu0 %696 }
 0x44a   : > { %v701_v59 = vpop.permute.xlu0 %700 }
 0x44b   : > { %v703_v53 = vsel %vm523_vm2, %v697_v55, %v701_v59 }
 0x44c   : > { %v739_v54 = vpack.c.bf16 %v703_v53, %v703_v53 }
 0x44e   : > { %v911_v60 = vpop.permute.xlu0 %910 }
 0x452   : > { %v915_v4 = vpop.permute.xlu0 %914 }
 0x453   : > { %v917_v6 = vsel %vm523_vm2, %v911_v60, %v915_v4 }
 0x454   : > { %v919_v14 = vpack.c.bf16 %v917_v6, %v917_v6 }
 0x456   : > { %v876_v16 = vpop.permute.xlu0 %875  ;;  %v924_v20 = vsel %vm562_vm3, %v919_v14, 0 }
 0x457   : > { %2981 = vmatpush3.bf16.xpose.msra.mxu0 %v924_v20 }
 0x458   : > { %2992 = vmatprep.subr.bf16.mxu0 %v3376_v34 }
 0x45a   : > { %v880_v25 = vpop.permute.xlu0 %879 }
 0x45b   : > { %v882_v26 = vsel %vm523_vm2, %v876_v16, %v880_v25 }
 0x45c   : > { %v918_v27 = vpack.c.bf16 %v882_v26, %v882_v26 }
 0x45e   : > { %2983 = vmatmul.mubr.msk.bf16.vlgmr.msra.gmra.mxu0 %vm562_vm3, %v918_v27  ;;  %v1089_v13 = vpop.permute.xlu0 %1088 }
 0x45f   : > { %2994 = vmatprep.mubr.msk.bf16.mxu0 %vm3377_vm1, %v3376_v34 }
 0x462   : > { %v617_v28 = vpop.xlane.xlu1 %616  ;;  %v1054_v29 = vpop.permute.xlu0 %1053 }
 0x463   : > { %3261 = vrcp.f32 %v617_v28 }
 0x466   : > { %v1093_v30 = vpop.permute.xlu1 %1092  ;;  %v1058_v36 = vpop.permute.xlu0 %1057 }
 0x467   : > { %v1095_v31 = vsel %vm523_vm2, %v1089_v13, %v1093_v30  ;;  %v1060_v38 = vsel %vm523_vm2, %v1054_v29, %v1058_v36 }
 0x468   : > { %v1097_v35 = vpack.c.bf16 %v1095_v31, %v1095_v31  ;;  %v1096_v46 = vpack.c.bf16 %v1060_v38, %v1060_v38 }
 0x46a   : > { %v1102_v37 = vsel %vm562_vm3, %v1097_v35, 0 }
 0x46b   : > { %2993 = vmatpush3.bf16.xpose.msra.mxu0 %v1102_v37 }
 0x46c   : > { %3004 = vmatprep.subr.bf16.mxu0 %v3376_v34 }
 0x470   : > { %v3262_v45 = vpop.eup %3261 }
 0x471   : > { %v619_v48 = vmul.f32 %v3262_v45, %v3753_v62 }
 0x472   : > { %2995 = vmatmul.mubr.msk.bf16.vlgmr.msra.gmra.mxu0 %vm562_vm3, %v1096_v46 }
 0x473   : > { %v620_v50 = vpack.c.bf16 %v619_v48, %v619_v48  ;;  %3012 = vmatprep.mubr.msk.bf16.mxu0 %vm3377_vm1, %v3376_v34 }
 0x475   : > { %2965 = vmatmul.mubr.msk.bf16.vlgmr.msra.gmra.mxu1 %vm523_vm2, %v620_v50 }
 0x476   : > { %2969 = vmatpush3.bf16.xpose.msra.mxu1 %v745_v12  ;;  %2970 = vmatprep.mubr.msk.bf16.mxu1 %vm3377_vm1, %v3376_v34 }
 0x477   : > { %2974 = vmatprep.subr.bf16.mxu1 %v3376_v34 }
 0x47d   : > { %2971 = vmatmul.mubr.msk.bf16.vlgmr.msra.gmra.mxu1 %vm562_vm3, %v739_v54 }
 0x47e   : > { %2976 = vmatprep.mubr.msk.bf16.mxu1 %vm3377_vm1, %v3376_v34 }
 0x51e   : > { %v960_v62 = vpop.f32.mrf.mxu0 }
 0x51f   : > { %v966_v60 = vsel %vm523_vm2, %v960_v62, -inf }
 0x520   : > { %967 = vmax.xlane.f32.xlu1 %v966_v60  ;;  %v2984_v4 = vpop.f32.mrf.mxu0 }
 0x522   : > { %v963_v6 = vpop.f32.mrf.mxu0 }
 0x524   : > { %v2985_v14 = vpop.f32.mrf.mxu0 }
 0x531   : > { %800 = vrot.lane.b32.xlu1 %v3639_v56, %s4338_s30  ;;  %s4365_s30 = smov 40  }
 0x532   : > { %v1138_v16 = vpop.f32.mrf.mxu0 }
 0x533   : > { %v1144_v35 = vsel %vm523_vm2, %v1138_v16, -inf }
 0x534   : > { %v2996_v20 = vpop.f32.mrf.mxu0 }
 0x535   : > { %v3820_v25 = vpop.f32.mrf.mxu1  ;;  %1156 = vrot.lane.b32.xlu1 %v3639_v56, %s4356_s24 }
 0x536   : > { %v1141_v55 = vpop.f32.mrf.mxu0 }
 0x537   : > { %v2966_v59 = vpop.f32.mrf.mxu1 }
 0x538   : > { %v2997_v26 = vpop.f32.mrf.mxu0 }
 0x539   : > { %v666_v27 = vpop.f32.mrf.mxu1 }
 0x53b   : > { %v2967_v13 = vpop.f32.mrf.mxu1 }
 0x53d   : > { %v781_v28 = vpop.f32.mrf.mxu1 }
 0x53e   : > { %v787_v29 = vsel %vm523_vm2, %v781_v28, -inf }
 0x53f   : > { %788 = vmax.xlane.f32.xlu0 %v787_v29  ;;  %v2972_v30 = vpop.f32.mrf.mxu1 }
 0x541   : > { %v784_v31 = vpop.f32.mrf.mxu1 }
 0x543   : > { %v2973_v36 = vpop.f32.mrf.mxu1  ;;  %1145 = vmax.xlane.f32.xlu0 %v1144_v35 }
 0x5a9   : > { %v968_v37 = vpop.xlane.xlu1 %967 }
 0x5aa   : > { %v969_v38 = vsub.f32 %v960_v62, %v968_v37 }
 0x5ac   : > { %v970_v41 = vmul.f32 1.442695, %v969_v38 }
 0x5ad   : > { %v801_v45 = vpop.permute.xlu1 %800 }
 0x5ae   : > { %3263 = vpow2.f32 %v970_v41  ;;  %v806_v46 = vsel %vm625_vm4, %v801_v45, 0  ;;  %v3185_v45 = vld [vmem:[%s4319_s5 + $0x18] sm:$0xff]  }
 0x5af   : > { %2975 = vmatpush3.bf16.msra.mxu1 %v806_v46  ;;  %3005 = vmatpush3.bf16.msra.mxu0 %v3185_v45  ;;  %v3186_v46 = vld [vmem:[%s4319_s5 + $0x10] sm:$0xff]  }
 0x5b0   : > { %2986 = vmatprep.subr.bf16.mxu1 %v3376_v34  ;;  %3006 = vmatprep.subr.bf16.mxu0 %v3376_v34  ;;  %v3191_v45 = vld [vmem:[%s4321_s7 + $0x34] ss:$8 sps:$4 sm:$0xff]  }
 0x5b1   : > { %v1157_v31 = vpop.permute.xlu1 %1156 }
 0x5b2   : > { %v1162_v37 = vsel %vm625_vm4, %v1157_v31, 0 }
 0x5b3   : > { %3007 = vmatpush3.bf16.msra.mxu0 %v3186_v46  ;;  %v3192_v46 = vld [vmem:[%s4321_s7 + $0x20] ss:$8 sps:$4 sm:$0xff]  }
 0x5b4   : > { %3008 = vmatprep.subr.bf16.mxu0 %v3376_v34 }
 0x5bb   : > { %v3264_v47 = vpop.eup %3263 }
 0x5bc   : > { %v972_v48 = vsel %vm523_vm2, %v3264_v47, 0.0 }
 0x5bd   : > { %973 = vadd.xlane.f32.xlu0 %v972_v48 }
 0x5c8   : > { %v789_v50 = vpop.xlane.xlu0 %788 }
 0x5c9   : > { %v790_v12 = vsub.f32 %v781_v28, %v789_v50 }
 0x5cb   : > { %v791_v53 = vmul.f32 1.442695, %v790_v12  ;;  %v3188_v12 = vld [vmem:[%s4319_s5] sm:$0xff]  }
 0x5cc   : > { %v1146_v54 = vpop.xlane.xlu0 %1145 }
 0x5cd   : > { %3265 = vpow2.f32 %v791_v53  ;;  %v1147_v60 = vsub.f32 %v1138_v16, %v1146_v54 }
 0x5cf   : > { %v1148_v4 = vmul.f32 1.442695, %v1147_v60 }
 0x5d1   : > { %3267 = vpow2.f32 %v1148_v4 }
 0x5da   : > { %v3266_v62 = vpop.eup %3265 }
 0x5db   : > { %v793_v6 = vsel %vm523_vm2, %v3266_v62, 0.0 }
 0x5dc   : > { %794 = vadd.xlane.f32.xlu0 %v793_v6 }
 0x5de   : > { %v3268_v14 = vpop.eup %3267 }
 0x5df   : > { %v1150_v20 = vsel %vm523_vm2, %v3268_v14, 0.0 }
 0x5e0   : > { %1151 = vadd.xlane.f32.xlu0 %v1150_v20 }
 0x5f6   : > { %978 = vrot.lane.b32.xlu0 %v3639_v56, %s4336_s15  ;;  %s4361_s15 = smov 72  }
 0x646   : > { %v974_v55 = vpop.xlane.xlu0 %973 }
 0x665   : > { %v795_v59 = vpop.xlane.xlu0 %794 }
 0x666   : > { %3269 = vrcp.f32 %v795_v59 }
 0x667   : > { %3271 = vrcp.f32 %v974_v55 }
 0x669   : > { %v1152_v26 = vpop.xlane.xlu0 %1151 }
 0x66a   : > { %3273 = vrcp.f32 %v1152_v26 }
 0x66d   : > { %v979_v13 = vpop.permute.xlu0 %978 }
 0x66e   : > { %v984_v30 = vsel %vm625_vm4, %v979_v13, 0 }
 0x673   : > { %v3270_v16 = vpop.eup %3269 }
 0x674   : > { %v797_v27 = vmul.f32 %v3270_v16, %v3266_v62  ;;  %v3272_v29 = vpop.eup %3271 }
 0x675   : > { %v976_v56 = vmul.f32 %v3272_v29, %v3264_v47  ;;  %v3187_v47 = vld [vmem:[%s4319_s5 + $0x8] sm:$0xff]  }
 0x676   : > { %v798_v28 = vpack.c.bf16 %v797_v27, %v797_v27  ;;  %3009 = vmatpush3.bf16.msra.mxu0 %v3187_v47  ;;  %v3197_v47 = vld [vmem:[%s4321_s7 + $0x14] ss:$8 sps:$4 sm:$0xff]  }
 0x677   : > { %v977_v35 = vpack.c.bf16 %v976_v56, %v976_v56  ;;  %v3274_v36 = vpop.eup %3273  ;;  %3010 = vmatprep.subr.bf16.mxu0 %v3376_v34 }
 0x678   : > { %2977 = vmatmul.mubr.msk.bf16.vlgmr.msra.gmra.mxu1 %vm523_vm2, %v798_v28  ;;  %v1154_v38 = vmul.f32 %v3274_v36, %v3268_v14 }
 0x679   : > { %2987 = vmatpush3.bf16.msra.mxu1 %v984_v30  ;;  %2988 = vmatprep.mubr.msk.bf16.mxu1 %vm3377_vm1, %v3376_v34 }
 0x67a   : > { %2998 = vmatprep.subr.bf16.mxu1 %v3376_v34  ;;  %v1155_v41 = vpack.c.bf16 %v1154_v38, %v1154_v38  ;;  %3011 = vmatpush3.bf16.msra.mxu0 %v3188_v12  ;;  %v3198_v12 = vld [vmem:[%s4321_s7] ss:$8 sps:$4 sm:$0xff]  }
 0x67b   : > { %3016 = vmatprep.subr.bf16.mxu0 %v3376_v34 }
 0x680   : > { %2989 = vmatmul.mubr.msk.bf16.vlgmr.msra.gmra.mxu1 %vm523_vm2, %v977_v35 }
 0x681   : > { %2999 = vmatpush3.bf16.msra.mxu1 %v1162_v37  ;;  %3000 = vmatprep.mubr.msk.bf16.mxu1 %vm3377_vm1, %v3376_v34 }
 0x682   : > { %1374 = vmatprep.subr.bf16.mxu1 %v3191_v45 }
 0x688   : > { %3001 = vmatmul.mubr.msk.bf16.vlgmr.msra.gmra.mxu1 %vm523_vm2, %v1155_v41  ;;  %v3189_v41 = vld [vmem:[%s4321_s7 + $0x30] ss:$8 sps:$4 sm:$0xff]  }
 0x689   : > { %1398 = vmatprep.mubr.bf16.mxu1 %v3371_v8  ;;  %1375 = vmatpush1.bf16.msra.mxu1 %v3189_v41 }
 0x738   : > { %v842_v48 = vpop.f32.mrf.mxu1 }
 0x739   : > { %1205 = vrot.lane.b32.xlu1 %v842_v48, %s4345_s16  ;;  %v3195_v48 = vld [vmem:[%s4321_s7 + $0x10] ss:$8 sps:$4 sm:$0xff]   ;;  %s4360_s16 = smov 64  }
 0x73a   : > { %v2978_v50 = vpop.f32.mrf.mxu1 }
 0x73b   : > { %v3200_v50 = vld [vmem:[%s4321_s7 + $0x4] ss:$8 sps:$4 sm:$0xff]  }
 0x73c   : > { %v845_v53 = vpop.f32.mrf.mxu1 }
 0x73e   : > { %v2979_v54 = vpop.f32.mrf.mxu1 }
 0x740   : > { %v1020_v60 = vpop.f32.mrf.mxu1 }
 0x741   : > { %1209 = vrot.lane.b32.xlu0 %v1020_v60, %s4347_s22  ;;  %s4364_s22 = smov 112  }
 0x742   : > { %v2990_v4 = vpop.f32.mrf.mxu1 }
 0x744   : > { %v1023_v62 = vpop.f32.mrf.mxu1 }
 0x745   : > { %v2777_v62 = vld [vmem:[%s4320_s6] ss:$0 sm:$0xff] }
 0x746   : > { %v2991_v6 = vpop.f32.mrf.mxu1 }
 0x748   : > { %v1198_v14 = vpop.f32.mrf.mxu1 }
 0x749   : > { %1213 = vrot.lane.b32.xlu1 %v1198_v14, %s4358_s29 }
 0x74a   : > { %v3002_v20 = vpop.f32.mrf.mxu1 }
 0x74c   : > { %v1201_v55 = vpop.f32.mrf.mxu1 }
 0x74d   : > { %v3201_v55 = vld [vmem:[%s4322_s8 + $0x38] sm:$0xff]  }
 0x74e   : > { %v3003_v59 = vpop.f32.mrf.mxu1 }
 0x74f   : > { %v3202_v59 = vld [vmem:[%s4322_s8 + $0x30] sm:$0xff]  }
 0x7ab   : > { %v1206_v26 = vpop.permute.xlu1 %1205 }
 0x7ac   : > { %v1216_v27 = vsel %vm562_vm3, %v3820_v25, %v1206_v26  ;;  %v3203_v26 = vld [vmem:[%s4322_s8 + $0x28] sm:$0xff]  }
 0x7b3   : > { %v1210_v16 = vpop.permute.xlu0 %1209 }
 0x7b4   : > { %v1218_v13 = vsel %vm1217_vm5, %v1216_v27, %v1210_v16  ;;  %v3204_v16 = vld [vmem:[%s4322_s8 + $0x20] sm:$0xff]   ;;  %v3205_v27 = vld [vmem:[%s4322_s8 + $0x18] sm:$0xff]  }
 0x7bb   : > { %v1214_v28 = vpop.permute.xlu1 %1213 }
 0x7bc   : > { %v1220_v29 = vsel %vm1219_vm6, %v1218_v13, %v1214_v28  ;;  %v3206_v13 = vld [vmem:[%s4322_s8 + $0x10] sm:$0xff]   ;;  %v3207_v28 = vld [vmem:[%s4322_s8 + $0x8] sm:$0xff]  }
 0x7bd   : > { %v1229_v30 = vpack.c.bf16 %v1220_v29, %v1220_v29  ;;  %v3208_v29 = vld [vmem:[%s4322_s8] sm:$0xff]  }
 0x7bf   : > { %3013 = vmatmul.mubr.msk.bf16.vlgmr.msra.gmra.mxu0 %vm388_vm0, %v1229_v30 }
 0x7c0   : > { %3032 = vmatprep.mubr.msk.bf16.mxu0 %vm3377_vm1, %v3376_v34  ;;  %3017 = vmatpush3.bf16.msra.mxu0 %v3201_v55  ;;  %v3220_v55 = vld [vmem:[%s4318_s4 + $0x44] ss:$8 sps:$4 sm:$0xff]  }
 0x7c1   : > { %3018 = vmatprep.subr.bf16.mxu0 %v3376_v34 }
 0x7c4   : > { %3019 = vmatpush3.bf16.msra.mxu0 %v3202_v59  ;;  %v3218_v59 = vld [vmem:[%s4318_s4 + $0x40] ss:$8 sps:$4 sm:$0xff]  }
 0x7c5   : > { %3020 = vmatprep.subr.bf16.mxu0 %v3376_v34 }
 0x7c8   : > { %3021 = vmatpush3.bf16.msra.mxu0 %v3203_v26 }
 0x7c9   : > { %3022 = vmatprep.subr.bf16.mxu0 %v3376_v34 }
 0x7cc   : > { %3023 = vmatpush3.bf16.msra.mxu0 %v3204_v16 }
 0x7cd   : > { %3024 = vmatprep.subr.bf16.mxu0 %v3376_v34 }
 0x7d0   : > { %3025 = vmatpush3.bf16.msra.mxu0 %v3205_v27 }
 0x7d1   : > { %3026 = vmatprep.subr.bf16.mxu0 %v3376_v34 }
 0x7d4   : > { %3027 = vmatpush3.bf16.msra.mxu0 %v3206_v13 }
 0x7d5   : > { %3028 = vmatprep.subr.bf16.mxu0 %v3376_v34 }
 0x7d8   : > { %3029 = vmatpush3.bf16.msra.mxu0 %v3207_v28  ;;  %v2797_v28 = vld [vmem:[%s4317_s3 + $0x1] ss:$0 sm:$0xff] }
 0x7d9   : > { %3030 = vmatprep.subr.bf16.mxu0 %v3376_v34 }
 0x7dc   : > { %3031 = vmatpush3.bf16.msra.mxu0 %v3208_v29 }
 0x7dd   : > { %3048 = vmatprep.subr.bf16.mxu0 %v3376_v34 }
 0x87f   : > { %v1291_v56 = vpop.f32.mrf.mxu0 }
 0x880   : > { %v3871_v31 = vadd.f32 %v1291_v56, %v3503_v0  ;;  %v3194_v0 = vld [vmem:[%s4321_s7 + $0x24] ss:$8 sps:$4 sm:$0xff]  }
 0x881   : > { %v3014_v35 = vpop.f32.mrf.mxu0  ;;  %1376 = vmatprep.subr.bf16.mxu1 %v3194_v0 }
 0x882   : > { %v1299_v36 = vmul.f32 %v3871_v31, %v3871_v31  ;;  %1377 = vmatpush1.bf16.msra.mxu1 %v3192_v46 }
 0x883   : > { %v1294_v25 = vpop.f32.mrf.mxu0  ;;  %1378 = vmatprep.subr.bf16.mxu1 %v3197_v47 }
 0x884   : > { %v1300_v37 = vsel %vm388_vm0, %v1299_v36, 0.0 }
 0x885   : > { %1301 = vadd.xlane.f32.xlu0 %v1300_v37  ;;  %v3015_v38 = vpop.f32.mrf.mxu0 }
 0x886   : > { %1379 = vmatpush1.bf16.msra.mxu1 %v3195_v48 }
 0x887   : > { %1380 = vmatprep.subr.bf16.mxu1 %v3200_v50 }
 0x88a   : > { %1381 = vmatpush1.bf16.msra.mxu1 %v3198_v12 }
 0x90e   : > { %v1302_v53 = vpop.xlane.xlu0 %1301 }
 0x90f   : > { %v1303_v54 = vmul.f32 0.015625, %v1302_v53 }
 0x911   : > { %v1304_v60 = vadd.f32 1e-06, %v1303_v54 }
 0x913   : > { %3275 = vrsqrt.f32 %v1304_v60 }
 0x920   : > { %v3276_v4 = vpop.eup %3275 }
 0x921   : > { %v1306_v6 = vmul.f32 %v3276_v4, %v3871_v31  ;;  %v3209_v4 = vld [vmem:[%s4318_s4 + $0x70] ss:$8 sps:$4 sm:$0xff]  }
 0x923   : > { %v1313_v14 = vmul.f32 %v2777_v62, %v1306_v6  ;;  %v3211_v62 = vld [vmem:[%s4318_s4 + $0x74] ss:$8 sps:$4 sm:$0xff]   ;;  %v3212_v6 = vld [vmem:[%s4318_s4 + $0x60] ss:$8 sps:$4 sm:$0xff]  }
 0x924   : > { %1599 = vmatprep.subr.bf16.mxu1 %v3211_v62 }
 0x925   : > { %v1322_v20 = vpack.c.bf16 %v1313_v14, %v1313_v14  ;;  %v3217_v14 = vld [vmem:[%s4318_s4 + $0x54] ss:$8 sps:$4 sm:$0xff]  }
 0x927   : > { %2786 = vmatmul.mubr.msk.bf16.vlgmr.msra.gmra.mxu1 %vm388_vm0, %v1322_v20  ;;  %v3215_v20 = vld [vmem:[%s4318_s4 + $0x50] ss:$8 sps:$4 sm:$0xff]  }
 0x928   : > { %1623 = vmatprep.mubr.bf16.mxu1 %v3371_v8  ;;  %1600 = vmatpush1.bf16.msra.mxu1 %v3209_v4 }
 0x9e7   : > { %v1400_v30 = vpop.f32.mrf.mxu1 }
 0x9e8   : > { %v2787_v56 = vmul.f32 -1.442695, %v1400_v30 }
 0x9e9   : > { %v1402_v35 = vpop.f32.mrf.mxu1 }
 0x9ea   : > { %3277 = vpow2.f32 %v2787_v56 }
 0x9eb   : > { %v1404_v36 = vpop.f32.mrf.mxu1 }
 0x9ed   : > { %v1405_v25 = vpop.f32.mrf.mxu1 }
 0x9f7   : > { %v3278_v37 = vpop.eup %3277 }
 0x9f8   : > { %v1410_v38 = vadd.f32 1.0, %v3278_v37 }
 0x9fa   : > { %3279 = vrcp.f32 %v1410_v38 }
 0xa07   : > { %v3280_v41 = vpop.eup %3279 }
 0xa08   : > { %v1413_v45 = vmul.f32 %v3280_v41, %v1400_v30 }
 0xa0a   : > { %v1414_v0 = vmul.f32 %v1413_v45, %v1402_v35 }
 0xa0c   : > { %v1431_v46 = vpack.c.bf16 %v1414_v0, %v1414_v0 }
 0xa0e   : > { %3033 = vmatmul.mubr.bf16.vlgmr.msra.gmra.mxu0 %v1431_v46 }
 0xa0f   : > { %3050 = vmatprep.mubr.msk.bf16.mxu0 %vm3377_vm1, %v3376_v34 }
 0xace   : > { %v1514_v47 = vpop.f32.mrf.mxu0 }
 0xacf   : > { %v3941_v48 = vadd.f32 %v1514_v47, %v3871_v31  ;;  %v3214_v31 = vld [vmem:[%s4318_s4 + $0x64] ss:$8 sps:$4 sm:$0xff]  }
 0xad0   : > { %v3034_v50 = vpop.f32.mrf.mxu0  ;;  %1601 = vmatprep.subr.bf16.mxu1 %v3214_v31 }
 0xad1   : > { %v1523_v12 = vmul.f32 %v3941_v48, %v3941_v48  ;;  %1602 = vmatpush1.bf16.msra.mxu1 %v3212_v6 }
 0xad2   : > { %v1517_v53 = vpop.f32.mrf.mxu0  ;;  %1603 = vmatprep.subr.bf16.mxu1 %v3217_v14 }
 0xad3   : > { %v1524_v54 = vsel %vm388_vm0, %v1523_v12, 0.0 }
 0xad4   : > { %1525 = vadd.xlane.f32.xlu1 %v1524_v54  ;;  %v3035_v60 = vpop.f32.mrf.mxu0 }
 0xad5   : > { %1604 = vmatpush1.bf16.msra.mxu1 %v3215_v20 }
 0xad6   : > { %1605 = vmatprep.subr.bf16.mxu1 %v3220_v55 }
 0xad9   : > { %1606 = vmatpush1.bf16.msra.mxu1 %v3218_v59 }
 0xada   : > { %3036 = vmatprep.subr.bf16.mxu1 %v3376_v34 }
 0xb5d   : > { %v1526_v26 = vpop.xlane.xlu1 %1525 }
 0xb5e   : > { %v1527_v16 = vmul.f32 0.015625, %v1526_v26 }
 0xb60   : > { %v1528_v27 = vadd.f32 1e-06, %v1527_v16 }
 0xb62   : > { %3281 = vrsqrt.f32 %v1528_v27 }
 0xb6f   : > { %v3282_v13 = vpop.eup %3281 }
 0xb70   : > { %v1530_v29 = vmul.f32 %v3282_v13, %v3941_v48 }
 0xb72   : > { %v1537_v30 = vmul.f32 %v2797_v28, %v1530_v29 }
 0xb74   : > { %v1547_v56 = vpack.c.bf16 %v1537_v30, %v1537_v30 }
 0xb76   : > { %2814 = vmatmul.mubr.msk.bf16.vlgmr.msra.gmra.mxu1 %vm388_vm0, %v1547_v56 }
 0xb77   : > { %3038 = vmatprep.mubr.msk.bf16.mxu1 %vm3377_vm1, %v3376_v34 }
 0xc36   : > { %v3978_v35 = vpop.f32.mrf.mxu1 }
 0xc37   : > { %v1659_v36 = vmul.f32 %v3978_v35, %v3558_v22  ;;  %v1652_v25 = vmul.f32 %v3978_v35, %v3560_v23  ;;  %v1805_v41 = vmul.f32 %v3978_v35, %v3641_v57  ;;  %v1640_v45 = vmul.f32 %v3978_v35, %v3562_v24 }
 0xc38   : > { %v3984_v37 = vpop.f32.mrf.mxu1  ;;  %v1782_v22 = vmul.f32 %v3978_v35, %v3649_v61  ;;  %v1812_v23 = vmul.f32 %v3978_v35, %v3643_v58  ;;  %v1960_v57 = vmul.f32 %v3978_v35, %v3663_v2  ;;  %v1789_v24 = vmul.f32 %v3978_v35, %v3659_v1 }
 0xc39   : > { %1661 = vrot.lane.b32.xlu1 %v1659_v36, %s4359_s25  ;;  %1654 = vrot.lane.b32.xlu0 %v1652_v25, %s4359_s25  ;;  %v1937_v61 = vmul.f32 %v3978_v35, %v3672_v5  ;;  %v1967_v58 = vmul.f32 %v3978_v35, %v3667_v3  ;;  %v2114_v2 = vmul.f32 %v3978_v35, %v3681_v9 }
 0xc3a   : > { %v1629_v38 = vpop.f32.mrf.mxu1  ;;  %v1944_v1 = vmul.f32 %v3978_v35, %v3677_v7  ;;  %v2091_v5 = vmul.f32 %v3978_v35, %v3700_v17  ;;  %v2121_v3 = vmul.f32 %v3978_v35, %v3687_v11  ;;  %v2098_v9 = vmul.f32 %v3978_v35, %v3693_v15  ;;  %v3307_v11 = vld [vmem:[%s4316_s2] sm:$0xff] }
 0xc3b   : > { %v1658_v7 = vmul.f32 %v3978_v35, %v3581_v33  ;;  %v1651_v46 = vmul.f32 %v3978_v35, %v3579_v32  ;;  %v1639_v15 = vmul.f32 %v3307_v11, %v3978_v35  ;;  %v1633_v32 = vmul.f32 %v3978_v35, %v3597_v43 }
 0xc3c   : > { %v1630_v0 = vpop.f32.mrf.mxu1  ;;  %v1804_v60 = vmul.f32 %v3978_v35, %v3702_v18  ;;  %v1811_v4 = vmul.f32 %v3978_v35, %v3704_v19  ;;  %v1781_v20 = vmul.f32 %v3978_v35, %v3742_v49  ;;  %v1788_v43 = vmul.f32 %v3978_v35, %v3738_v42 }
 0xc3d   : > { %1807 = vrot.lane.b32.xlu1 %v1805_v41, %s4359_s25  ;;  %1642 = vrot.lane.b32.xlu0 %v1640_v45, %s4359_s25  ;;  %v1959_v19 = vmul.f32 %v3978_v35, %v3744_v51  ;;  %v1966_v49 = vmul.f32 %v3978_v35, %v3740_v44  ;;  %v1936_v42 = vmul.f32 %v3978_v35, %v3762_v10 }
 0xc3e   : > { %v1943_v51 = vmul.f32 %v3978_v35, %v3748_v52  ;;  %v2113_v44 = vmul.f32 %v3978_v35, %v3767_v21  ;;  %v2120_v10 = vmul.f32 %v3978_v35, %v3755_v63  ;;  %v2090_v52 = vmul.f32 %v3978_v35, %v3782_v40  ;;  %v3308_v40 = vld [vmem:[%s4315_s1] sm:$0xff] }
 0xc3f   : > { %v2097_v21 = vmul.f32 %v3978_v35, %v3780_v39 }
 0xc41   : > { %1784 = vrot.lane.b32.xlu1 %v1782_v22, %s4359_s25  ;;  %1814 = vrot.lane.b32.xlu0 %v1812_v23, %s4359_s25 }
 0xc45   : > { %1962 = vrot.lane.b32.xlu1 %v1960_v57, %s4359_s25  ;;  %1791 = vrot.lane.b32.xlu0 %v1789_v24, %s4359_s25 }
 0xc49   : > { %1939 = vrot.lane.b32.xlu1 %v1937_v61, %s4359_s25  ;;  %1969 = vrot.lane.b32.xlu0 %v1967_v58, %s4359_s25  ;;  %v1632_v58 = vmul.f32 %v3308_v40, %v3978_v35 }
 0xc4d   : > { %2116 = vrot.lane.b32.xlu1 %v2114_v2, %s4359_s25  ;;  %1946 = vrot.lane.b32.xlu0 %v1944_v1, %s4359_s25 }
 0xc51   : > { %2093 = vrot.lane.b32.xlu1 %v2091_v5, %s4359_s25  ;;  %2123 = vrot.lane.b32.xlu0 %v2121_v3, %s4359_s25 }
 0xc55   : > { %2100 = vrot.lane.b32.xlu0 %v2098_v9, %s4359_s25  ;;  %v4087_v9 = vpack.c.bf16 %v3984_v37, %v3984_v37 }
 0xc57   : > { %v1739_v11 = vsel %vm625_vm4, %v4087_v9, 0 }
 0xcab   : > { %v1662_v47 = vpop.permute.xlu1 %1661  ;;  %v1655_v17 = vpop.permute.xlu0 %1654 }
 0xcac   : > { %v1664_v50 = vadd.f32 %v1662_v47, %v1658_v7  ;;  %v1657_v12 = vsub.f32 %v1651_v46, %v1655_v17 }
 0xcae   : > { %1666 = vrot.lane.b32.xlu1 %v1657_v12, %s4360_s16  ;;  %1670 = vrot.lane.b32.xlu0 %v1664_v50, %s4361_s15  ;;  %s4368_s16 = smov 96   ;;  %s4369_s15 = smov 24  }
 0xcaf   : > { %v1808_v53 = vpop.permute.xlu1 %1807  ;;  %v1643_v54 = vpop.permute.xlu0 %1642 }
 0xcb0   : > { %v1645_v33 = vadd.f32 %v1643_v54, %v1639_v15  ;;  %v1810_v6 = vsub.f32 %v1804_v60, %v1808_v53 }
 0xcb2   : > { %1647 = vrot.lane.b32.xlu0 %v1645_v33, %s4362_s19  ;;  %1635 = vrot.lane.b32.xlu1 %v1633_v32, %s4359_s25  ;;  %s2895_s19 = sshll.u32 %s3471_s21, 8  ;;  %s3389_s21 = smov [#allocation2]  }
 0xcb3   : > { %v1785_v62 = vpop.permute.xlu1 %1784  ;;  %v1815_v31 = vpop.permute.xlu0 %1814 }
 0xcb4   : > { %v1817_v14 = vadd.f32 %v1815_v31, %v1811_v4  ;;  %v1787_v59 = vsub.f32 %v1781_v20, %v1785_v62 }
 0xcb6   : > { %1823 = vrot.lane.b32.xlu0 %v1817_v14, %s4363_s26  ;;  %1819 = vrot.lane.b32.xlu1 %v1810_v6, %s4358_s29  ;;  %s4275_s26 = scalar_lea.hbm %s4325_s11, %s2895_s19 }
 0xcb7   : > { %v1963_v18 = vpop.permute.xlu1 %1962  ;;  %v1792_v55 = vpop.permute.xlu0 %1791 }
 0xcb8   : > { %v1794_v26 = vadd.f32 %v1792_v55, %v1788_v43  ;;  %v1965_v13 = vsub.f32 %v1959_v19, %v1963_v18 }
 0xcba   : > { %1800 = vrot.lane.b32.xlu0 %v1794_v26, %s4359_s25  ;;  %1796 = vrot.lane.b32.xlu1 %v1787_v59, %s4364_s22  ;;  %s4367_s25 = smov 104  }
 0xcbb   : > { %v1940_v16 = vpop.permute.xlu1 %1939  ;;  %v1970_v27 = vpop.permute.xlu0 %1969 }
 0xcbc   : > { %v1972_v28 = vadd.f32 %v1970_v27, %v1966_v49  ;;  %v1942_v56 = vsub.f32 %v1936_v42, %v1940_v16 }
 0xcbe   : > { %1978 = vrot.lane.b32.xlu0 %v1972_v28, %s4365_s30  ;;  %1974 = vrot.lane.b32.xlu1 %v1965_v13, %s4366_s12 }
 0xcbf   : > { %v2117_v29 = vpop.permute.xlu1 %2116  ;;  %v1947_v30 = vpop.permute.xlu0 %1946 }
 0xcc0   : > { %v1949_v36 = vadd.f32 %v1947_v30, %v1943_v51  ;;  %v2119_v38 = vsub.f32 %v2113_v44, %v2117_v29 }
 0xcc2   : > { %1955 = vrot.lane.b32.xlu0 %v1949_v36, %s4367_s25  ;;  %1951 = vrot.lane.b32.xlu1 %v1942_v56, %s4368_s16  ;;  %s3313_s25 = sshll.u32 %s3389_s21, 4  ;;  %s3314_s25 = int_to_ptr.vmem [resolvable:$false] %s3313_s25 }
 0xcc3   : > { %v2124_v25 = vpop.permute.xlu0 %2123  ;;  %v2094_v45 = vpop.permute.xlu1 %2093 }
 0xcc4   : > { %v2126_v41 = vadd.f32 %v2124_v25, %v2120_v10  ;;  %v2096_v22 = vsub.f32 %v2090_v52, %v2094_v45 }
 0xcc6   : > { %2132 = vrot.lane.b32.xlu0 %v2126_v41, %s4369_s15  ;;  %2128 = vrot.lane.b32.xlu1 %v2119_v38, %s4370_s13 }
 0xcc7   : > { %v2101_v0 = vpop.permute.xlu0 %2100 }
 0xcc8   : > { %v2103_v23 = vadd.f32 %v2101_v0, %v2097_v21 }
 0xcca   : > { %2109 = vrot.lane.b32.xlu0 %v2103_v23, %s4357_s14  ;;  %2105 = vrot.lane.b32.xlu1 %v2096_v22, %s4356_s24 }
 0xd20   : > { %v1667_v63 = vpop.permute.xlu1 %1666  ;;  %v1671_v57 = vpop.permute.xlu0 %1670 }
 0xd21   : > { %v1673_v24 = vsel %vm523_vm2, %v1667_v63, %v1671_v57 }
 0xd22   : > { %v1675_v61 = vpack.c.bf16 %v1673_v24, %v1673_v24 }
 0xd24   : > { %v1648_v2 = vpop.permute.xlu0 %1647  ;;  %v1636_v39 = vpop.permute.xlu1 %1635  ;;  %v1680_v1 = vsel %vm562_vm3, %v1675_v61, 0 }
 0xd25   : > { %v1638_v5 = vsub.f32 %v1632_v58, %v1636_v39  ;;  %3037 = vmatpush3.bf16.xpose.msra.mxu1 %v1680_v1 }
 0xd26   : > { %3042 = vmatprep.subr.bf16.mxu1 %v3376_v34 }
 0xd27   : > { %v1650_v3 = vsel %vm523_vm2, %v1638_v5, %v1648_v2 }
 0xd28   : > { %v1824_v7 = vpop.permute.xlu0 %1823  ;;  %v1820_v46 = vpop.permute.xlu1 %1819  ;;  %v1674_v17 = vpack.c.bf16 %v1650_v3, %v1650_v3 }
 0xd29   : > { %v1826_v47 = vsel %vm523_vm2, %v1820_v46, %v1824_v7 }
 0xd2a   : > { %v1828_v35 = vpack.c.bf16 %v1826_v47, %v1826_v47 }
 0xd2c   : > { %v1801_v50 = vpop.permute.xlu0 %1800  ;;  %v1797_v12 = vpop.permute.xlu1 %1796  ;;  %3039 = vmatmul.mubr.msk.bf16.vlgmr.msra.gmra.mxu1 %vm562_vm3, %v1674_v17  ;;  %v1833_v15 = vsel %vm562_vm3, %v1828_v35, 0 }
 0xd2d   : > { %3043 = vmatpush3.bf16.msra.mxu1 %v1739_v11  ;;  %3049 = vmatpush3.bf16.xpose.msra.mxu0 %v1833_v15  ;;  %v1803_v37 = vsel %vm523_vm2, %v1797_v12, %v1801_v50 }
 0xd2e   : > { %3060 = vmatprep.subr.bf16.mxu0 %v3376_v34  ;;  %3044 = vmatprep.mubr.msk.bf16.mxu1 %vm3377_vm1, %v3376_v34  ;;  %v1827_v32 = vpack.c.bf16 %v1803_v37, %v1803_v37 }
 0xd2f   : > { %3054 = vmatprep.subr.bf16.mxu1 %v3376_v34 }
 0xd30   : > { %v1979_v53 = vpop.permute.xlu0 %1978  ;;  %v1975_v54 = vpop.permute.xlu1 %1974 }
 0xd31   : > { %v1981_v33 = vsel %vm523_vm2, %v1975_v54, %v1979_v53 }
 0xd32   : > { %v1983_v60 = vpack.c.bf16 %v1981_v33, %v1981_v33 }
 0xd34   : > { %v1956_v4 = vpop.permute.xlu0 %1955  ;;  %3051 = vmatmul.mubr.msk.bf16.vlgmr.msra.gmra.mxu0 %vm562_vm3, %v1827_v32  ;;  %v1952_v62 = vpop.permute.xlu1 %1951  ;;  %v1988_v31 = vsel %vm562_vm3, %v1983_v60, 0 }
 0xd35   : > { %3061 = vmatpush3.bf16.xpose.msra.mxu0 %v1988_v31  ;;  %3062 = vmatprep.mubr.msk.bf16.mxu0 %vm3377_vm1, %v3376_v34  ;;  %v1958_v6 = vsel %vm523_vm2, %v1952_v62, %v1956_v4 }
 0xd36   : > { %3072 = vmatprep.subr.bf16.mxu0 %v3376_v34  ;;  %v1982_v18 = vpack.c.bf16 %v1958_v6, %v1958_v6 }
 0xd38   : > { %v2133_v14 = vpop.permute.xlu0 %2132  ;;  %v2129_v20 = vpop.permute.xlu1 %2128 }
 0xd39   : > { %v2135_v43 = vsel %vm523_vm2, %v2129_v20, %v2133_v14 }
 0xd3a   : > { %v2137_v55 = vpack.c.bf16 %v2135_v43, %v2135_v43 }
 0xd3c   : > { %v2110_v59 = vpop.permute.xlu0 %2109  ;;  %3063 = vmatmul.mubr.msk.bf16.vlgmr.msra.gmra.mxu0 %vm562_vm3, %v1982_v18  ;;  %v2106_v26 = vpop.permute.xlu1 %2105  ;;  %v2142_v19 = vsel %vm562_vm3, %v2137_v55, 0 }
 0xd3d   : > { %3073 = vmatpush3.bf16.xpose.msra.mxu0 %v2142_v19  ;;  %3074 = vmatprep.mubr.msk.bf16.mxu0 %vm3377_vm1, %v3376_v34  ;;  %v2112_v49 = vsel %vm523_vm2, %v2106_v26, %v2110_v59 }
 0xd3e   : > { %3084 = vmatprep.subr.bf16.mxu0 %v3376_v34  ;;  %v2136_v16 = vpack.c.bf16 %v2112_v49, %v2112_v49 }
 0xd44   : > { %3075 = vmatmul.mubr.msk.bf16.vlgmr.msra.gmra.mxu0 %vm562_vm3, %v2136_v16 }
 0xd45   : > { %3092 = vmatprep.mubr.msk.bf16.mxu0 %vm3377_vm1, %v3376_v34 }
 0xdec   : > { %v1716_v27 = vpop.f32.mrf.mxu1 }
 0xded   : > { %v1722_v13 = vsel %vm523_vm2, %v1716_v27, -inf }
 0xdee   : > { %1723 = vmax.xlane.f32.xlu1 %v1722_v13  ;;  %v3040_v28 = vpop.f32.mrf.mxu1 }
 0xdf0   : > { %v1719_v42 = vpop.f32.mrf.mxu1 }
 0xdf2   : > { %v3041_v51 = vpop.f32.mrf.mxu1 }
 0xdf3   : > { %v3221_v51 = vld [vmem:[%s4319_s5 + $0x38] sm:$0xff]  }
 0xdf4   : > { %v1869_v29 = vpop.f32.mrf.mxu0  ;;  %3085 = vmatpush3.bf16.msra.mxu0 %v3221_v51 }
 0xdf5   : > { %v1875_v30 = vsel %vm523_vm2, %v1869_v29, -inf  ;;  %3086 = vmatprep.subr.bf16.mxu0 %v3376_v34 }
 0xdf6   : > { %1876 = vmax.xlane.f32.xlu0 %v1875_v30  ;;  %v3052_v56 = vpop.f32.mrf.mxu0  ;;  %v3222_v30 = vld [vmem:[%s4319_s5 + $0x30] sm:$0xff]  }
 0xdf8   : > { %v1872_v36 = vpop.f32.mrf.mxu0  ;;  %3087 = vmatpush3.bf16.msra.mxu0 %v3222_v30 }
 0xdf9   : > { %3088 = vmatprep.subr.bf16.mxu0 %v3376_v34 }
 0xdfa   : > { %v3053_v44 = vpop.f32.mrf.mxu0 }
 0xdfb   : > { %v3223_v44 = vld [vmem:[%s4319_s5 + $0x28] sm:$0xff]  }
 0xdfc   : > { %v2024_v10 = vpop.f32.mrf.mxu0  ;;  %3089 = vmatpush3.bf16.msra.mxu0 %v3223_v44 }
 0xdfd   : > { %v2030_v25 = vsel %vm523_vm2, %v2024_v10, -inf  ;;  %3090 = vmatprep.subr.bf16.mxu0 %v3376_v34 }
 0xdfe   : > { %2031 = vmax.xlane.f32.xlu0 %v2030_v25  ;;  %v3064_v38 = vpop.f32.mrf.mxu0 }
 0xe00   : > { %v2027_v41 = vpop.f32.mrf.mxu0 }
 0xe02   : > { %v3065_v45 = vpop.f32.mrf.mxu0 }
 0xe04   : > { %v2178_v52 = vpop.f32.mrf.mxu0 }
 0xe05   : > { %v2184_v21 = vsel %vm523_vm2, %v2178_v52, -inf }
 0xe06   : > { %v3076_v0 = vpop.f32.mrf.mxu0  ;;  %2185 = vmax.xlane.f32.xlu1 %v2184_v21  ;;  %v3224_v21 = vld [vmem:[%s4319_s5 + $0x20] sm:$0xff]  }
 0xe07   : > { %3091 = vmatpush3.bf16.msra.mxu0 %v3224_v21  ;;  %v3248_v21 = vld [vmem:[%s4324_s10 + $0x20] ss:$8 sps:$4 sm:$0xff]  }
 0xe08   : > { %v2181_v22 = vpop.f32.mrf.mxu0  ;;  %3096 = vmatprep.subr.bf16.mxu0 %v3376_v34 }
 0xe0a   : > { %v3077_v23 = vpop.f32.mrf.mxu0 }
 0xe77   : > { %v1724_v63 = vpop.xlane.xlu1 %1723 }
 0xe78   : > { %v1725_v57 = vsub.f32 %v1716_v27, %v1724_v63 }
 0xe7a   : > { %v1726_v24 = vmul.f32 1.442695, %v1725_v57 }
 0xe7c   : > { %3283 = vpow2.f32 %v1726_v24 }
 0xe7f   : > { %v1877_v61 = vpop.xlane.xlu0 %1876 }
 0xe80   : > { %v1878_v40 = vsub.f32 %v1869_v29, %v1877_v61 }
 0xe82   : > { %v1879_v58 = vmul.f32 1.442695, %v1878_v40 }
 0xe84   : > { %3285 = vpow2.f32 %v1879_v58 }
 0xe87   : > { %v2032_v2 = vpop.xlane.xlu0 %2031 }
 0xe88   : > { %v2033_v39 = vsub.f32 %v2024_v10, %v2032_v2 }
 0xe89   : > { %v3284_v1 = vpop.eup %3283 }
 0xe8a   : > { %v2034_v5 = vmul.f32 1.442695, %v2033_v39  ;;  %v1728_v3 = vsel %vm523_vm2, %v3284_v1, 0.0 }
 0xe8b   : > { %1729 = vadd.xlane.f32.xlu0 %v1728_v3 }
 0xe8c   : > { %3287 = vpow2.f32 %v2034_v5 }
 0xe8f   : > { %v2186_v35 = vpop.xlane.xlu1 %2185 }
 0xe90   : > { %v2187_v50 = vsub.f32 %v2178_v52, %v2186_v35  ;;  %v3225_v35 = vld [vmem:[%s4321_s7 + $0x70] ss:$8 sps:$4 sm:$0xff]  }
 0xe91   : > { %v3286_v7 = vpop.eup %3285 }
 0xe92   : > { %v1881_v46 = vsel %vm523_vm2, %v3286_v7, 0.0  ;;  %v2188_v12 = vmul.f32 1.442695, %v2187_v50  ;;  %v3227_v50 = vld [vmem:[%s4321_s7 + $0x74] ss:$8 sps:$4 sm:$0xff]  }
 0xe93   : > { %1882 = vadd.xlane.f32.xlu1 %v1881_v46 }
 0xe94   : > { %3289 = vpow2.f32 %v2188_v12  ;;  %v3228_v12 = vld [vmem:[%s4321_s7 + $0x60] ss:$8 sps:$4 sm:$0xff]  }
 0xe99   : > { %v3288_v47 = vpop.eup %3287 }
 0xe9a   : > { %v2036_v17 = vsel %vm523_vm2, %v3288_v47, 0.0 }
 0xe9b   : > { %2037 = vadd.xlane.f32.xlu0 %v2036_v17 }
 0xea1   : > { %v3290_v11 = vpop.eup %3289 }
 0xea2   : > { %v2190_v15 = vsel %vm523_vm2, %v3290_v11, 0.0 }
 0xea4   : > { %2042 = vrot.lane.b32.xlu1 %v4087_v9, %s4368_s16  ;;  %s3315_s16 = scalar_lea.vmem %s3314_s25, 512 }
 0xeb1   : > { %1888 = vrot.lane.b32.xlu0 %v4087_v9, %s4364_s22 }
 0xec8   : > { %2191 = vadd.xlane.f32.xlu1 %v2190_v15  ;;  %v3231_v15 = vld [vmem:[%s4321_s7 + $0x50] ss:$8 sps:$4 sm:$0xff]  }
 0xed9   : > { %2196 = vrot.lane.b32.xlu1 %v4087_v9, %s4356_s24 }
 0xf14   : > { %v1730_v37 = vpop.xlane.xlu0 %1729 }
 0xf15   : > { %3291 = vrcp.f32 %v1730_v37  ;;  %v3236_v37 = vld [vmem:[%s4321_s7 + $0x44] ss:$8 sps:$4 sm:$0xff]  }
 0xf1c   : > { %v1883_v53 = vpop.xlane.xlu1 %1882 }
 0xf1d   : > { %3293 = vrcp.f32 %v1883_v53  ;;  %v3234_v53 = vld [vmem:[%s4321_s7 + $0x40] ss:$8 sps:$4 sm:$0xff]  }
 0xf20   : > { %v2043_v6 = vpop.permute.xlu1 %2042 }
 0xf21   : > { %v2048_v20 = vsel %vm625_vm4, %v2043_v6, 0  ;;  %v3237_v6 = vld [vmem:[%s4322_s8 + $0x78] sm:$0xff]  }
 0xf22   : > { %v3292_v54 = vpop.eup %3291 }
 0xf23   : > { %v1732_v33 = vmul.f32 %v3292_v54, %v3284_v1 }
 0xf24   : > { %v2038_v32 = vpop.xlane.xlu0 %2037 }
 0xf25   : > { %3295 = vrcp.f32 %v2038_v32  ;;  %v1733_v60 = vpack.c.bf16 %v1732_v33, %v1732_v33 }
 0xf27   : > { %3045 = vmatmul.mubr.msk.bf16.vlgmr.msra.gmra.mxu1 %vm523_vm2, %v1733_v60 }
 0xf28   : > { %v1889_v4 = vpop.permute.xlu0 %1888  ;;  %3056 = vmatprep.mubr.msk.bf16.mxu1 %vm3377_vm1, %v3376_v34 }
 0xf29   : > { %v1894_v62 = vsel %vm625_vm4, %v1889_v4, 0  ;;  %v2837_v4 = vld [vmem:[%s4320_s6 + $0x1] ss:$0 sm:$0xff] }
 0xf2a   : > { %v3294_v31 = vpop.eup %3293  ;;  %3055 = vmatpush3.bf16.msra.mxu1 %v1894_v62 }
 0xf2b   : > { %3066 = vmatprep.subr.bf16.mxu1 %v3376_v34  ;;  %v1885_v9 = vmul.f32 %v3294_v31, %v3286_v7 }
 0xf2d   : > { %v1886_v14 = vpack.c.bf16 %v1885_v9, %v1885_v9 }
 0xf2f   : > { %3057 = vmatmul.mubr.msk.bf16.vlgmr.msra.gmra.mxu1 %vm523_vm2, %v1886_v14  ;;  %v3238_v14 = vld [vmem:[%s4322_s8 + $0x70] sm:$0xff]  }
 0xf30   : > { %3067 = vmatpush3.bf16.msra.mxu1 %v2048_v20  ;;  %3068 = vmatprep.mubr.msk.bf16.mxu1 %vm3377_vm1, %v3376_v34  ;;  %v3239_v20 = vld [vmem:[%s4322_s8 + $0x68] sm:$0xff]  }
 0xf31   : > { %3078 = vmatprep.subr.bf16.mxu1 %v3376_v34 }
 0xf32   : > { %v3296_v43 = vpop.eup %3295 }
 0xf33   : > { %v2040_v18 = vmul.f32 %v3296_v43, %v3288_v47  ;;  %v3241_v43 = vld [vmem:[%s4322_s8 + $0x58] sm:$0xff]  }
 0xf35   : > { %v2041_v55 = vpack.c.bf16 %v2040_v18, %v2040_v18  ;;  %v3242_v18 = vld [vmem:[%s4322_s8 + $0x50] sm:$0xff]  }
 0xf37   : > { %3069 = vmatmul.mubr.msk.bf16.vlgmr.msra.gmra.mxu1 %vm523_vm2, %v2041_v55  ;;  %v3243_v55 = vld [vmem:[%s4322_s8 + $0x48] sm:$0xff]  }
 0xf38   : > { %3080 = vmatprep.mubr.msk.bf16.mxu1 %vm3377_vm1, %v3376_v34 }
 0xf51   : > { %v2192_v59 = vpop.xlane.xlu1 %2191 }
 0xf52   : > { %3297 = vrcp.f32 %v2192_v59  ;;  %v3244_v59 = vld [vmem:[%s4322_s8 + $0x40] sm:$0xff]  }
 0xf55   : > { %v2197_v26 = vpop.permute.xlu1 %2196 }
 0xf56   : > { %v2202_v19 = vsel %vm625_vm4, %v2197_v26, 0 }
 0xf57   : > { %3079 = vmatpush3.bf16.msra.mxu1 %v2202_v19 }
 0xf58   : > { %2415 = vmatprep.subr.bf16.mxu1 %v3227_v50 }
 0xf5f   : > { %v3298_v49 = vpop.eup %3297 }
 0xf60   : > { %v2194_v16 = vmul.f32 %v3298_v49, %v3290_v11  ;;  %v3233_v11 = vld [vmem:[%s4321_s7 + $0x54] ss:$8 sps:$4 sm:$0xff]  }
 0xf62   : > { %v2195_v27 = vpack.c.bf16 %v2194_v16, %v2194_v16 }
 0xf64   : > { %3081 = vmatmul.mubr.msk.bf16.vlgmr.msra.gmra.mxu1 %vm523_vm2, %v2195_v27 }
 0xf65   : > { %2439 = vmatprep.mubr.bf16.mxu1 %v3371_v8  ;;  %2416 = vmatpush1.bf16.msra.mxu1 %v3225_v35 }
 0xfe7   : > { %v1775_v13 = vpop.f32.mrf.mxu1 }
 0xfe9   : > { %v3046_v28 = vpop.f32.mrf.mxu1 }
 0xfeb   : > { %v1778_v42 = vpop.f32.mrf.mxu1 }
 0xfed   : > { %v3047_v29 = vpop.f32.mrf.mxu1 }
 0xfef   : > { %v1930_v56 = vpop.f32.mrf.mxu1 }
 0xff0   : > { %2245 = vrot.lane.b32.xlu0 %v1930_v56, %s4370_s13 }
 0xff1   : > { %v3058_v36 = vpop.f32.mrf.mxu1 }
 0xff3   : > { %v1933_v10 = vpop.f32.mrf.mxu1 }
 0xff5   : > { %v3059_v25 = vpop.f32.mrf.mxu1 }
 0xff7   : > { %v2084_v38 = vpop.f32.mrf.mxu1 }
 0xff8   : > { %2249 = vrot.lane.b32.xlu1 %v2084_v38, %s4366_s12 }
 0xff9   : > { %v3070_v41 = vpop.f32.mrf.mxu1 }
 0xffa   : > { %v3245_v41 = vld [vmem:[%s4324_s10 + $0x30] ss:$8 sps:$4 sm:$0xff]  }
 0xffb   : > { %v2087_v45 = vpop.f32.mrf.mxu1 }
 0xffc   : > { %v3247_v45 = vld [vmem:[%s4324_s10 + $0x34] ss:$8 sps:$4 sm:$0xff]  }
 0xffd   : > { %v3071_v52 = vpop.f32.mrf.mxu1 }
 0xffe   : > { %v3250_v52 = vld [vmem:[%s4324_s10 + $0x24] ss:$8 sps:$4 sm:$0xff]  }
0x1024   : > { %v2238_v0 = vpop.f32.mrf.mxu1 }
0x1025   : > { %2253 = vrot.lane.b32.xlu0 %v2238_v0, %s4358_s29  ;;  %v3253_v0 = vld [vmem:[%s4324_s10 + $0x14] ss:$8 sps:$4 sm:$0xff]   ;;  %s375_s29 = sand.u32 1, %s3361_s18  }
0x1026   : > { %v3082_v22 = vpop.f32.mrf.mxu1  ;;  %s2752_s12 = sshll.u32 %s375_s29, 4  ;;  %s2675_s22 = scalar_lea.sflag [#allocation3], %s375_s29 }
0x1027   : > { %v3251_v22 = vld [vmem:[%s4324_s10 + $0x10] ss:$8 sps:$4 sm:$0xff]   ;;  %s377_s13 = scalar_lea.vmem [#allocation2], %s2752_s12 }
0x1028   : > { %v2241_v23 = vpop.f32.mrf.mxu1  ;;  %s2689_s0 = sshll.u32 %s377_s13, 4  ;;  %s4270_s0 = int_to_ptr.vmem [resolvable:$true] %s2689_s0 }
0x1029   : > { %v3256_v23 = vld [vmem:[%s4324_s10 + $0x4] ss:$8 sps:$4 sm:$0xff]   ;;  %s3309_s30 = scalar_lea.vmem %s4270_s0, 256  ;;  %p3316_p0 = scmp.lt.s32.totalorder %s4270_s0, %s3314_s25 }
0x102a   : > { %v3083_v63 = vpop.f32.mrf.mxu1  ;;  %p3310_p11 = scmp.ne.s32.totalorder %s4270_s0, %s3309_s30  ;;  %p3317_p1 = scmp.lt.s32.totalorder %s3315_s16, %s3309_s30 }
0x102b   : > { %v3254_v63 = vld [vmem:[%s4324_s10] ss:$8 sps:$4 sm:$0xff]  }
0x102c   : > { %p3311_p12 = pnand %p3310_p11, %p3488_p5  ;;  %p3318_p2 = por %p3317_p1, %p3316_p0 }
0x102e   : > { %p3312_p13 = pneg %p3311_p12 }
0x1030   : > { %p3319_p3 = pnand %p3318_p2, %p3312_p13 }
0x1062   : > { %v2246_v57 = vpop.permute.xlu0 %2245 }
0x1063   : > { %v2256_v61 = vsel %vm562_vm3, %v1775_v13, %v2246_v57 }
0x106a   : > { %v2250_v24 = vpop.permute.xlu1 %2249 }
0x106b   : > { %v2257_v40 = vsel %vm1217_vm5, %v2256_v61, %v2250_v24 }
0x1097   : > { %v2254_v58 = vpop.permute.xlu0 %2253 }
0x1098   : > { %v2258_v2 = vsel %vm1219_vm6, %v2257_v40, %v2254_v58  ;;  %v2880_v58 = vld [vmem:[%s4323_s9] ss:$0 sm:$0xff] }
0x1099   : > { %v2268_v39 = vpack.c.bf16 %v2258_v2, %v2258_v2 }
0x109b   : > { %3093 = vmatmul.mubr.msk.bf16.vlgmr.msra.gmra.mxu0 %vm388_vm0, %v2268_v39 }
0x109c   : > { %3112 = vmatprep.mubr.msk.bf16.mxu0 %vm3377_vm1, %v3376_v34  ;;  %3097 = vmatpush3.bf16.msra.mxu0 %v3237_v6 }
0x109d   : > { %3098 = vmatprep.subr.bf16.mxu0 %v3376_v34 }
0x10a0   : > { %3099 = vmatpush3.bf16.msra.mxu0 %v3238_v14 }
0x10a1   : > { %3100 = vmatprep.subr.bf16.mxu0 %v3376_v34 }
0x10a4   : > { %3101 = vmatpush3.bf16.msra.mxu0 %v3239_v20 }
0x10a5   : > { %3102 = vmatprep.subr.bf16.mxu0 %v3376_v34 }
0x115b   : > { %v2330_v1 = vpop.f32.mrf.mxu0 }
0x115c   : > { %v4172_v5 = vadd.f32 %v2330_v1, %v3941_v48  ;;  %v3230_v48 = vld [vmem:[%s4321_s7 + $0x64] ss:$8 sps:$4 sm:$0xff]  }
0x115d   : > { %v3094_v3 = vpop.f32.mrf.mxu0  ;;  %2417 = vmatprep.subr.bf16.mxu1 %v3230_v48 }
0x115e   : > { %v2339_v7 = vmul.f32 %v4172_v5, %v4172_v5  ;;  %2418 = vmatpush1.bf16.msra.mxu1 %v3228_v12 }
0x115f   : > { %v2333_v46 = vpop.f32.mrf.mxu0  ;;  %2419 = vmatprep.subr.bf16.mxu1 %v3233_v11 }
0x1160   : > { %v2340_v47 = vsel %vm388_vm0, %v2339_v7, 0.0 }
0x1161   : > { %2341 = vadd.xlane.f32.xlu1 %v2340_v47  ;;  %v3095_v17 = vpop.f32.mrf.mxu0 }
0x1162   : > { %2420 = vmatpush1.bf16.msra.mxu1 %v3231_v15 }
0x1163   : > { %2421 = vmatprep.subr.bf16.mxu1 %v3236_v37 }
0x1166   : > { %2422 = vmatpush1.bf16.msra.mxu1 %v3234_v53 }
0x1167   : > { %2639 = vmatprep.subr.bf16.mxu1 %v3247_v45 }
0x11ea   : > { %v2342_v54 = vpop.xlane.xlu1 %2341 }
0x11eb   : > { %v2343_v33 = vmul.f32 0.015625, %v2342_v54 }
0x11ed   : > { %v2344_v32 = vadd.f32 1e-06, %v2343_v33 }
0x11ef   : > { %3299 = vrsqrt.f32 %v2344_v32 }
0x11fc   : > { %v3300_v60 = vpop.eup %3299 }
0x11fd   : > { %v2346_v62 = vmul.f32 %v3300_v60, %v4172_v5 }
0x11ff   : > { %v2353_v31 = vmul.f32 %v2837_v4, %v2346_v62 }
0x1201   : > { %v2363_v9 = vpack.c.bf16 %v2353_v31, %v2353_v31 }
0x1203   : > { %2854 = vmatmul.mubr.msk.bf16.vlgmr.msra.gmra.mxu1 %vm388_vm0, %v2363_v9 }
0x1204   : > { %2663 = vmatprep.mubr.bf16.mxu1 %v3371_v8  ;;  %v3240_v8 = vld [vmem:[%s4322_s8 + $0x60] sm:$0xff]   ;;  %2640 = vmatpush1.bf16.msra.mxu1 %v3245_v41 }
0x1205   : > { %3103 = vmatpush3.bf16.msra.mxu0 %v3240_v8  ;;  %2641 = vmatprep.subr.bf16.mxu1 %v3250_v52 }
0x1206   : > { %3104 = vmatprep.subr.bf16.mxu0 %v3376_v34 }
0x1208   : > { %2642 = vmatpush1.bf16.msra.mxu1 %v3248_v21 }
0x1209   : > { %3105 = vmatpush3.bf16.msra.mxu0 %v3241_v43  ;;  %2643 = vmatprep.subr.bf16.mxu1 %v3253_v0 }
0x120a   : > { %3106 = vmatprep.subr.bf16.mxu0 %v3376_v34 }
0x120c   : > { %2644 = vmatpush1.bf16.msra.mxu1 %v3251_v22 }
0x120d   : > { %3107 = vmatpush3.bf16.msra.mxu0 %v3242_v18  ;;  %2645 = vmatprep.subr.bf16.mxu1 %v3256_v23 }
0x120e   : > { %3108 = vmatprep.subr.bf16.mxu0 %v3376_v34 }
0x1210   : > { %2646 = vmatpush1.bf16.msra.mxu1 %v3254_v63 }
0x1211   : > { %3109 = vmatpush3.bf16.msra.mxu0 %v3243_v55 }
0x1212   : > { %3110 = vmatprep.subr.bf16.mxu0 %v3376_v34 }
0x1215   : > { %3111 = vmatpush3.bf16.msra.mxu0 %v3244_v59 }
0x12c3   : > { %v2441_v26 = vpop.f32.mrf.mxu1 }
0x12c4   : > { %v2855_v19 = vmul.f32 -1.442695, %v2441_v26 }
0x12c5   : > { %v2443_v49 = vpop.f32.mrf.mxu1 }
0x12c6   : > { %3301 = vpow2.f32 %v2855_v19 }
0x12c7   : > { %v2445_v16 = vpop.f32.mrf.mxu1 }
0x12c9   : > { %v2446_v27 = vpop.f32.mrf.mxu1 }
0x12d3   : > { %v3302_v13 = vpop.eup %3301 }
0x12d4   : > { %v2451_v28 = vadd.f32 1.0, %v3302_v13 }
0x12d6   : > { %3303 = vrcp.f32 %v2451_v28 }
0x12e3   : > { %v3304_v42 = vpop.eup %3303 }
0x12e4   : > { %v2454_v51 = vmul.f32 %v3304_v42, %v2441_v26 }
0x12e6   : > { %v2455_v29 = vmul.f32 %v2454_v51, %v2443_v49 }
0x12e8   : > { %v2473_v30 = vpack.c.bf16 %v2455_v29, %v2455_v29 }
0x12ea   : > { %3113 = vmatmul.mubr.bf16.vlgmr.msra.gmra.mxu0 %v2473_v30 }
0x13aa   : > { %v2556_v56 = vpop.f32.mrf.mxu0 }
0x13ab   : > { %v2562_v36 = vadd.f32 %v2556_v56, %v4172_v5 }
0x13ac   : > { %v3114_v44 = vpop.f32.mrf.mxu0 }
0x13ad   : > { %v2564_v34 = vmul.f32 %v2562_v36, %v2562_v36 }
0x13ae   : > { %v2559_v10 = vpop.f32.mrf.mxu0 }
0x13af   : > { %v2565_v25 = vsel %vm388_vm0, %v2564_v34, 0.0 }
0x13b0   : > { %2566 = vadd.xlane.f32.xlu0 %v2565_v25  ;;  %v3115_v38 = vpop.f32.mrf.mxu0 }
0x1439   : > { %v2567_v57 = vpop.xlane.xlu0 %2566 }
0x143a   : > { %v2568_v24 = vmul.f32 0.015625, %v2567_v57 }
0x143c   : > { %v2569_v61 = vadd.f32 1e-06, %v2568_v24 }
0x143e   : > { %3305 = vrsqrt.f32 %v2569_v61 }
0x144b   : > { %v3306_v40 = vpop.eup %3305 }
0x144c   : > { %v2571_v2 = vmul.f32 %v3306_v40, %v2562_v36 }
0x144e   : > { %v2578_v39 = vmul.f32 %v2880_v58, %v2571_v2 }
0x1450   : > { %v2587_v1 = vpack.c.bf16 %v2578_v39, %v2578_v39 }
0x1452   : > { %2889 = vmatmul.mubr.msk.bf16.vlgmr.msra.gmra.mxu1 %vm388_vm0, %v2587_v1 }
0x1512   : > { %v2665_v5 = vpop.f32.mrf.mxu1 }
0x1513   : > { %2672 = vst [vmem:[%s377_s13] sm:$0xff] %v2665_v5 }
0x1514   : > { %v2667_v3 = vpop.f32.mrf.mxu1 }
0x1515   : > { %2673 = vst [vmem:[%s377_s13 + $0x8] sm:$0xff] %v2667_v3 }
0x1516   : > { %v2669_v7 = vpop.f32.mrf.mxu1 }
0x1517   : > { %3322 = shalt.err (!%p3319_p3)
}
0x1518   : > { %s3323_s15 = scalar_lea.hbm %s4275_s26, 256  ;;  %s3327_s13 = scalar_lea.hbm %s4325_s11, 512 }
0x1519   : > { %p3324_p4 = scmp.ne.s32.totalorder %s4275_s26, %s3323_s15  ;;  %p3328_p9 = scmp.lt.s32.totalorder %s4275_s26, %s4325_s11 }
0x151a   : > { %p3329_p10 = scmp.lt.s32.totalorder %s3327_s13, %s3323_s15 }
0x151b   : > { %p3325_p7 = pnand %p3324_p4, %p3488_p5 }
0x151c   : > { %p3330_p11 = por %p3329_p10, %p3328_p9 }
0x151d   : > { %p3326_p8 = pneg %p3325_p7 }
0x151f   : > { %p3331_p12 = pnand %p3330_p11, %p3326_p8 }
0x1521   : > { %3334 = shalt.err (!%p3331_p12)
}
0x1522   : > { %3116 = dma.vmem_to_hbm [thread:$0]  (%p3488_p5), %s4270_s0, 256, %s4275_s26, %s2675_s22   ;;  %v2670_v46 = vpop.f32.mrf.mxu1 }
0x1523 PF: > { %p3122_p13 = scmp.ge.s32.totalorder %s3369_s20, 2  ;;  %s2701_s24 = sand.u32 1, %s3357_s17  }
0x1524   : > { %s2702_s30 = scalar_lea.sflag [#allocation3], %s2701_s24 }
0x1525   : > { %p3119_p0 = pnand %p3122_p13, %p3492_p6 }
0x1527   : > { %p3120_p1 = pneg %p3119_p0 }
0x1529   : > { %3352 = dma.done.wait (%p3120_p1), %s2702_s30, 256  }
0x152a   : > { %3354 = vsyncadd (%p3120_p1), %s2702_s30, 4294967040  ;;  %s4371_s21 = sld [smem:[#allocation5_spill]]  ;;  %p21_p2 = scmp.ge.s32.totalorder %s3475_s23, 4  }
0x152b   : > { %s4372_s19 = sld [smem:[#allocation6_spill]]  ;;  %s4373_s17 = smov %s3361_s18 }
0x152c   : > { %s4375_s20 = smov %s3475_s23  ;;  %23 = sbr.rel (!%p21_p2) target bundleno = 5 (0x5), region = 105 }
0x1530   : > { %s4374_s18 = smov %s4371_s21 }
0x1531   :  { %2707 = vsyncpa [#allocation3], 1 }
0x1532   :  { %2709 = vsyncpa [#allocation3 + $0x1], 1 }

</bundles_post_ra>
